<compile_context>
chip_gen: v5e
topology: v5e:2x2
jax: 0.10.0
libtpu: 0.0.40
codegen_flags: <defaults>
</compile_context>

<pallas_src>
import functools

import jax
import jax.numpy as jnp
from jax import lax
from jax.experimental import pallas as pl
from jax.experimental.pallas import tpu as pltpu


def _silu(v):
    # v * sigmoid(v); the reciprocal rides the EUP (approx) right next to the exp.
    return v * pl.reciprocal(1.0 + jnp.exp(-v), approx=True)


def _slab_layout(Cin, Chid, Cout, NH):
    """Column layout of the single packed parameter slab (Chid rows)."""
    entries = [
        ("w1", Chid, Cin),    # expand 1x1 weight, BN0/BN1 scales folded in
        ("b1", Chid, 1),      # folded expand bias: a1*(W1 @ b0) + b1
        ("wd", Chid, 9),      # depthwise 3x3 taps (kh*3+kw), BN2 scale folded in
        ("b2", Chid, 1),      # BN2 shift
        ("w3", Cout, Chid),   # project 1x1 weight, BN3 scale folded in
        ("b3", Cout, 1),      # BN3 shift
        ("sw1", Cout, NH),    # SE Linear1 weight^T
        ("sb1", 1, NH),       # SE Linear1 bias
        ("sw2", Cout, NH),    # SE Linear2 weight
        ("sb2", Cout, 1),     # SE Linear2 bias
    ]
    off, c = {}, 0
    for name, r, w in entries:
        off[name] = (c, r, w)
        c += w
    return off, c


def inverted_residual_kernel(x_ref, p_ref, o_ref, *, H, W, off):
    HW = H * W
    f32 = jnp.float32
    bf16 = jnp.bfloat16

    def param(name):
        c, r, w = off[name]
        return p_ref[0:r, c:c + w]

    x = x_ref[...]                                                  # (Cin, HW) f32

    # --- expand 1x1 conv (BN0 & BN1 folded into the weight + one bias) + SiLU ------
    h = jnp.dot(param("w1").astype(bf16), x.astype(bf16),
                preferred_element_type=f32) + param("b1")           # (Chid, HW)
    h = _silu(h)

    # --- depthwise 3x3, stride 1, pad 1, via lane rotations (no scratch) -----------
    # Taps that would read the zero padding (or wrap across rows / the roll seam of the
    # flattened lane axis) are killed by iota-derived 0/1 masks.
    idx = lax.broadcasted_iota(jnp.int32, (1, HW), 1)
    wcol = (idx & (W - 1)) if (W & (W - 1)) == 0 else lax.rem(idx, W)
    mwl = (wcol != 0).astype(f32)           # column w-1 exists
    mwr = (wcol != W - 1).astype(f32)       # column w+1 exists
    mtop = (idx >= W).astype(f32)           # row h-1 exists
    mbot = (idx < HW - W).astype(f32)       # row h+1 exists

    left = pltpu.roll(h, shift=1, axis=1) * mwl         # h[:, i-1], valid where w > 0
    right = pltpu.roll(h, shift=HW - 1, axis=1) * mwr   # h[:, i+1], valid where w < W-1
    wd = param("wd")                                    # (Chid, 9), loaded once
    wk = [wd[:, k:k + 1] for k in range(9)]             # hoisted per-tap columns
    s0 = wk[0] * left + wk[1] * h + wk[2] * right       # horizontal sum, row offset -1
    s1 = wk[3] * left + wk[4] * h + wk[5] * right       # row offset 0
    s2 = wk[6] * left + wk[7] * h + wk[8] * right       # row offset +1
    dw = (pltpu.roll(s0, shift=W, axis=1) * mtop + s1
          + pltpu.roll(s2, shift=HW - W, axis=1) * mbot + param("b2"))
    s = _silu(dw)

    # --- project 1x1 conv (BN3 folded into the weight) -----------------------------
    y = jnp.dot(param("w3").astype(bf16), s.astype(bf16),
                preferred_element_type=f32) + param("b3")           # (Cout, HW)

    # --- SE: global avg pool -> Linear -> ReLU -> Linear -> Sigmoid -> scale -------
    # Tiny MLP done entirely on VPU/XLU (no MXU round trip on the epilogue path).
    pooled = jnp.sum(y, axis=1, keepdims=True) * (1.0 / HW)                    # (Cout, 1)
    z = jnp.maximum(
        jnp.sum(param("sw1") * pooled, axis=0, keepdims=True) + param("sb1"), 0.0)  # (1, NH)
    g = jnp.sum(param("sw2") * z, axis=1, keepdims=True) + param("sb2")        # (Cout, 1)
    gate = 1.0 / (1.0 + jnp.exp(-g))        # exact sigmoid: the gate scales whole channels

    # --- residual -------------------------------------------------------------------
    o_ref[...] = (x + y * gate).astype(o_ref.dtype)


def _pack_params(p, Cin, Chid, Cout, NH):
    """Fold every BatchNorm affine into the adjacent conv weights (host-side) and pack
    all parameters into one (Chid, cols) f32 slab sliced statically in the kernel."""
    off, cols = _slab_layout(Cin, Chid, Cout, NH)
    w1 = p["a1"] * (p["w1t"] * p["a0"].reshape(1, Cin))             # (Chid, Cin)
    b1 = p["a1"] * jnp.dot(p["w1t"], p["b0"]) + p["b1"]             # (Chid, 1)
    wd = p["wd"] * p["a2"]                                          # (Chid, 9)
    b2 = p["b2"]
    w3 = p["w3t"] * p["a3"]                                         # (Cout, Chid)
    b3 = p["b3"]
    pieces = dict(w1=w1, b1=b1, wd=wd, b2=b2, w3=w3, b3=b3,
                  sw1=p["sw1"], sb1=p["sb1"], sw2=p["sw2"], sb2=p["sb2"])
    slab = jnp.zeros((Chid, cols), jnp.float32)
    for name, arr in pieces.items():
        c, r, w = off[name]
        assert arr.shape == (r, w), (name, arr.shape, (r, w))
        slab = slab.at[0:r, c:c + w].set(arr.astype(jnp.float32))
    return slab, off, cols


def inverted_residual(x, params, *, stride=1):
    """x: (N, Cin, H, W) float32, PyTorch NCHW layout. Inference-mode BatchNorm."""
    N, Cin, H, W = x.shape
    Chid = params["w1t"].shape[0]
    Cout = params["w3t"].shape[0]
    NH = params["sw1"].shape[1]
    assert stride == 1 and Cin == Cout, (
        "only the residual (stride=1, inp==oup, expand_ratio!=1) variant is implemented")
    HW = H * W
    assert HW % 128 == 0, "H*W must be a multiple of 128 for lane-dense stores"
    assert Chid >= Cout

    xf = x.reshape(N, Cin, HW)                       # free reshape outside the kernel
    slab, off, cols = _pack_params(params, Cin, Chid, Cout, NH)

    grid_spec = pltpu.PrefetchScalarGridSpec(
        num_scalar_prefetch=0,
        grid=(N,),                                   # one image per step (2 TCs on v7x)
        in_specs=[
            pl.BlockSpec((None, Cin, HW), lambda n: (n, 0, 0)),
            pl.BlockSpec((Chid, cols), lambda n: (0, 0)),   # grid-invariant param slab
        ],
        out_specs=pl.BlockSpec((None, Cout, HW), lambda n: (n, 0, 0)),
    )
    out = pl.pallas_call(
        functools.partial(inverted_residual_kernel, H=H, W=W, off=off),
        out_shape=jax.ShapeDtypeStruct((N, Cout, HW), x.dtype),
        grid_spec=grid_spec,
        compiler_params=pltpu.CompilerParams(dimension_semantics=("parallel",)),
    )(xf, slab)
    return out.reshape(N, Cout, H, W)


def init_params(key, inp, oup, expand_ratio):
    """Deterministic synthetic parameters matching the PyTorch module's shapes."""
    hidden = int(round(inp * expand_ratio))
    nh = max(oup // 16, 4)
    eps = 1e-5
    ks = jax.random.split(key, 12)

    def bn(k, c):
        k1, k2, k3, k4 = jax.random.split(k, 4)
        gamma = 1.0 + 0.1 * jax.random.normal(k1, (c,), jnp.float32)
        beta = 0.1 * jax.random.normal(k2, (c,), jnp.float32)
        mean = 0.1 * jax.random.normal(k3, (c,), jnp.float32)
        var = jax.random.uniform(k4, (c,), jnp.float32, minval=0.5, maxval=1.5)
        scale = gamma / jnp.sqrt(var + eps)
        shift = beta - mean * scale
        return scale.reshape(c, 1), shift.reshape(c, 1)

    a0, b0 = bn(ks[0], inp)
    w1t = 0.3 * jax.random.normal(ks[1], (hidden, inp), jnp.float32)   # Conv2d(inp,hid,1).weight
    a1, b1 = bn(ks[2], hidden)
    wd = 0.3 * jax.random.normal(ks[3], (hidden, 9), jnp.float32)      # depthwise (C, kh*3+kw)
    a2, b2 = bn(ks[4], hidden)
    w3t = 0.3 * jax.random.normal(ks[5], (oup, hidden), jnp.float32)   # Conv2d(hid,oup,1).weight
    a3, b3 = bn(ks[6], oup)
    sw1 = 0.3 * jax.random.normal(ks[7], (oup, nh), jnp.float32)       # Linear(oup,nh).weight.T
    sb1 = 0.1 * jax.random.normal(ks[8], (1, nh), jnp.float32)
    sw2 = 0.3 * jax.random.normal(ks[9], (oup, nh), jnp.float32)       # Linear(nh,oup).weight
    sb2 = 0.1 * jax.random.normal(ks[10], (oup, 1), jnp.float32)
    return dict(a0=a0, b0=b0, w1t=w1t, a1=a1, b1=b1, wd=wd, a2=a2, b2=b2,
                w3t=w3t, a3=a3, b3=b3, sw1=sw1, sb1=sb1, sw2=sw2, sb2=sb2)


def reference(x, p):
    """Pure-JAX NCHW reference (f32/HIGHEST ground truth) of the same forward pass."""
    HIGH = lax.Precision.HIGHEST
    Chid = p["w1t"].shape[0]

    def bn(v, a, b):
        return v * a.reshape(1, -1, 1, 1) + b.reshape(1, -1, 1, 1)

    def silu(v):
        return v * jax.nn.sigmoid(v)

    h = bn(x, p["a0"], p["b0"])
    h = jnp.einsum("nchw,dc->ndhw", h, p["w1t"], precision=HIGH)
    h = silu(bn(h, p["a1"], p["b1"]))
    dwk = p["wd"].reshape(Chid, 1, 3, 3)
    h = lax.conv_general_dilated(h, dwk, window_strides=(1, 1),
                                 padding=((1, 1), (1, 1)),
                                 dimension_numbers=("NCHW", "OIHW", "NCHW"),
                                 feature_group_count=Chid, precision=HIGH)
    h = silu(bn(h, p["a2"], p["b2"]))
    y = jnp.einsum("nchw,dc->ndhw", h, p["w3t"], precision=HIGH)
    y = bn(y, p["a3"], p["b3"])
    se = jnp.mean(y, axis=(2, 3))                                       # (N, Cout)
    z = jnp.maximum(jnp.dot(se, p["sw1"], precision=HIGH) + p["sb1"], 0.0)
    g = jax.nn.sigmoid(jnp.dot(z, p["sw2"].T, precision=HIGH) + p["sb2"].reshape(1, -1))
    return x + y * g[:, :, None, None]


if __name__ == "__main__":
    key = jax.random.PRNGKey(0)
    kx, kp = jax.random.split(key)

    N, H, W = 2, 16, 16
    inp = oup = 8
    expand_ratio = 4          # hidden_dim = 32
    stride = 1                # -> use_res_connect path (BN + SE + residual)

    x = jax.random.normal(kx, (N, inp, H, W), jnp.float32)   # NCHW, like PyTorch
    params = init_params(kp, inp, oup, expand_ratio)

    out = inverted_residual(x, params, stride=stride)
    out = jax.block_until_ready(out)

    ref = reference(x, params)
    assert out.shape == (N, oup, H, W)
    err = float(jnp.max(jnp.abs(out - ref)))
    # Kernel uses single-pass bf16 MXU operands (f32 accumulation) and the approximate
    # EUP reciprocal inside the two big SiLUs; the reference is full-f32 HIGHEST, so
    # ~1e-2-scale tail deviations are expected.  Structural bugs would be O(1).
    assert err < 5e-2, f"max abs err = {err}"
    print("KERNEL_OK")
</pallas_src>

<mosaic_0001>
module attributes {stable_mosaic.version = 11 : i64} {
  func.func @inverted_residual_kernel(%arg0: i32, %arg1: memref<1x8x256xf32, #tpu.memory_space<vmem>>, %arg2: memref<32x65xf32, #tpu.memory_space<vmem>>, %arg3: memref<1x8x256xf32, #tpu.memory_space<vmem>>) attributes {dimension_semantics = [#tpu.dimension_semantics<parallel>], iteration_bounds = array<i64: 2>, scalar_prefetch = 0 : i64, scratch_operands = 0 : i64, tpu.core_type = #tpu.core_type<tc>, window_params = [{transform_indices = @transform_0, window_bounds = array<i64: 1, 8, 256>}, {pipeline_mode = #tpu.pipeline_mode<synchronous>, transform_indices = @transform_1, window_bounds = array<i64: 32, 65>}, {transform_indices = @transform_2, window_bounds = array<i64: 1, 8, 256>}]} {
    %c0 = arith.constant 0 : index
    %c0_0 = arith.constant 0 : index
    %c0_1 = arith.constant 0 : index
    %0 = vector.load %arg1[%c0, %c0_0, %c0_1] : memref<1x8x256xf32, #tpu.memory_space<vmem>>, vector<1x8x256xf32>
    %1 = vector.shape_cast %0 : vector<1x8x256xf32> to vector<8x256xf32>
    %c0_2 = arith.constant 0 : index
    %c0_3 = arith.constant 0 : index
    %2 = vector.load %arg2[%c0_2, %c0_3] : memref<32x65xf32, #tpu.memory_space<vmem>>, vector<32x8xf32>
    %3 = arith.truncf %2 : vector<32x8xf32> to vector<32x8xbf16>
    %4 = arith.truncf %1 : vector<8x256xf32> to vector<8x256xbf16>
    %cst = arith.constant dense<0.000000e+00> : vector<32x256xf32>
    %5 = tpu.matmul %3, %4, %cst {dimension_numbers = #tpu.dot_dimension_numbers<[1], [0], [0], [1], [0, 0, 1, 1], [], []>} : vector<32x8xbf16>, vector<8x256xbf16>, vector<32x256xf32> -> vector<32x256xf32>
    %c0_4 = arith.constant 0 : index
    %c8 = arith.constant 8 : index
    %6 = vector.load %arg2[%c0_4, %c8] : memref<32x65xf32, #tpu.memory_space<vmem>>, vector<32x1xf32>
    %7 = vector.broadcast %6 : vector<32x1xf32> to vector<32x256xf32>
    %8 = arith.addf %5, %7 : vector<32x256xf32>
    %cst_5 = arith.constant 0.000000e+00 : f32
    %9 = vector.broadcast %cst_5 : f32 to vector<32x256xf32>
    %10 = arith.subf %9, %8 : vector<32x256xf32>
    %11 = math.exp %10 : vector<32x256xf32>
    %cst_6 = arith.constant 1.000000e+00 : f32
    %12 = vector.broadcast %cst_6 : f32 to vector<32x256xf32>
    %13 = arith.addf %12, %11 : vector<32x256xf32>
    %14 = tpu.reciprocal %13 {approx = true} : vector<32x256xf32> -> vector<32x256xf32>
    %15 = arith.mulf %8, %14 : vector<32x256xf32>
    %16 = tpu.iota {dimensions = array<i32: 1>} : vector<1x256xi32>
    %c15_i32 = arith.constant 15 : i32
    %17 = vector.broadcast %c15_i32 : i32 to vector<1x256xi32>
    %18 = arith.andi %16, %17 : vector<1x256xi32>
    %c0_i32 = arith.constant 0 : i32
    %19 = vector.broadcast %c0_i32 : i32 to vector<1x256xi32>
    %20 = arith.cmpi ne, %18, %19 : vector<1x256xi32>
    %21 = arith.extui %20 : vector<1x256xi1> to vector<1x256xi32>
    %22 = arith.sitofp %21 : vector<1x256xi32> to vector<1x256xf32>
    %c15_i32_7 = arith.constant 15 : i32
    %23 = vector.broadcast %c15_i32_7 : i32 to vector<1x256xi32>
    %24 = arith.cmpi ne, %18, %23 : vector<1x256xi32>
    %25 = arith.extui %24 : vector<1x256xi1> to vector<1x256xi32>
    %26 = arith.sitofp %25 : vector<1x256xi32> to vector<1x256xf32>
    %c16_i32 = arith.constant 16 : i32
    %27 = vector.broadcast %c16_i32 : i32 to vector<1x256xi32>
    %28 = arith.cmpi sge, %16, %27 : vector<1x256xi32>
    %29 = arith.extui %28 : vector<1x256xi1> to vector<1x256xi32>
    %30 = arith.sitofp %29 : vector<1x256xi32> to vector<1x256xf32>
    %c240_i32 = arith.constant 240 : i32
    %31 = vector.broadcast %c240_i32 : i32 to vector<1x256xi32>
    %32 = arith.cmpi slt, %16, %31 : vector<1x256xi32>
    %33 = arith.extui %32 : vector<1x256xi1> to vector<1x256xi32>
    %34 = arith.sitofp %33 : vector<1x256xi32> to vector<1x256xf32>
    %c1_i32 = arith.constant 1 : i32
    %35 = tpu.dynamic_rotate %15 by %c1_i32 dim 1 : vector<32x256xf32>, i32 -> vector<32x256xf32>
    %36 = vector.broadcast %22 : vector<1x256xf32> to vector<32x256xf32>
    %37 = arith.mulf %35, %36 : vector<32x256xf32>
    %c255_i32 = arith.constant 255 : i32
    %38 = tpu.dynamic_rotate %15 by %c255_i32 dim 1 : vector<32x256xf32>, i32 -> vector<32x256xf32>
    %39 = vector.broadcast %26 : vector<1x256xf32> to vector<32x256xf32>
    %40 = arith.mulf %38, %39 : vector<32x256xf32>
    %c0_8 = arith.constant 0 : index
    %c9 = arith.constant 9 : index
    %41 = vector.load %arg2[%c0_8, %c9] : memref<32x65xf32, #tpu.memory_space<vmem>>, vector<32x9xf32>
    %42 = vector.extract_strided_slice %41 {offsets = [0, 0], sizes = [32, 1], strides = [1, 1]} : vector<32x9xf32> to vector<32x1xf32>
    %43 = vector.extract_strided_slice %41 {offsets = [0, 1], sizes = [32, 1], strides = [1, 1]} : vector<32x9xf32> to vector<32x1xf32>
    %44 = vector.extract_strided_slice %41 {offsets = [0, 2], sizes = [32, 1], strides = [1, 1]} : vector<32x9xf32> to vector<32x1xf32>
    %45 = vector.extract_strided_slice %41 {offsets = [0, 3], sizes = [32, 1], strides = [1, 1]} : vector<32x9xf32> to vector<32x1xf32>
    %46 = vector.extract_strided_slice %41 {offsets = [0, 4], sizes = [32, 1], strides = [1, 1]} : vector<32x9xf32> to vector<32x1xf32>
    %47 = vector.extract_strided_slice %41 {offsets = [0, 5], sizes = [32, 1], strides = [1, 1]} : vector<32x9xf32> to vector<32x1xf32>
    %48 = vector.extract_strided_slice %41 {offsets = [0, 6], sizes = [32, 1], strides = [1, 1]} : vector<32x9xf32> to vector<32x1xf32>
    %49 = vector.extract_strided_slice %41 {offsets = [0, 7], sizes = [32, 1], strides = [1, 1]} : vector<32x9xf32> to vector<32x1xf32>
    %50 = vector.extract_strided_slice %41 {offsets = [0, 8], sizes = [32, 1], strides = [1, 1]} : vector<32x9xf32> to vector<32x1xf32>
    %51 = vector.broadcast %42 : vector<32x1xf32> to vector<32x256xf32>
    %52 = arith.mulf %51, %37 : vector<32x256xf32>
    %53 = vector.broadcast %43 : vector<32x1xf32> to vector<32x256xf32>
    %54 = arith.mulf %53, %15 : vector<32x256xf32>
    %55 = arith.addf %52, %54 : vector<32x256xf32>
    %56 = vector.broadcast %44 : vector<32x1xf32> to vector<32x256xf32>
    %57 = arith.mulf %56, %40 : vector<32x256xf32>
    %58 = arith.addf %55, %57 : vector<32x256xf32>
    %59 = vector.broadcast %45 : vector<32x1xf32> to vector<32x256xf32>
    %60 = arith.mulf %59, %37 : vector<32x256xf32>
    %61 = vector.broadcast %46 : vector<32x1xf32> to vector<32x256xf32>
    %62 = arith.mulf %61, %15 : vector<32x256xf32>
    %63 = arith.addf %60, %62 : vector<32x256xf32>
    %64 = vector.broadcast %47 : vector<32x1xf32> to vector<32x256xf32>
    %65 = arith.mulf %64, %40 : vector<32x256xf32>
    %66 = arith.addf %63, %65 : vector<32x256xf32>
    %67 = vector.broadcast %48 : vector<32x1xf32> to vector<32x256xf32>
    %68 = arith.mulf %67, %37 : vector<32x256xf32>
    %69 = vector.broadcast %49 : vector<32x1xf32> to vector<32x256xf32>
    %70 = arith.mulf %69, %15 : vector<32x256xf32>
    %71 = arith.addf %68, %70 : vector<32x256xf32>
    %72 = vector.broadcast %50 : vector<32x1xf32> to vector<32x256xf32>
    %73 = arith.mulf %72, %40 : vector<32x256xf32>
    %74 = arith.addf %71, %73 : vector<32x256xf32>
    %c16_i32_9 = arith.constant 16 : i32
    %75 = tpu.dynamic_rotate %58 by %c16_i32_9 dim 1 : vector<32x256xf32>, i32 -> vector<32x256xf32>
    %76 = vector.broadcast %30 : vector<1x256xf32> to vector<32x256xf32>
    %77 = arith.mulf %75, %76 : vector<32x256xf32>
    %78 = arith.addf %77, %66 : vector<32x256xf32>
    %c240_i32_10 = arith.constant 240 : i32
    %79 = tpu.dynamic_rotate %74 by %c240_i32_10 dim 1 : vector<32x256xf32>, i32 -> vector<32x256xf32>
    %80 = vector.broadcast %34 : vector<1x256xf32> to vector<32x256xf32>
    %81 = arith.mulf %79, %80 : vector<32x256xf32>
    %82 = arith.addf %78, %81 : vector<32x256xf32>
    %c0_11 = arith.constant 0 : index
    %c18 = arith.constant 18 : index
    %83 = vector.load %arg2[%c0_11, %c18] : memref<32x65xf32, #tpu.memory_space<vmem>>, vector<32x1xf32>
    %84 = vector.broadcast %83 : vector<32x1xf32> to vector<32x256xf32>
    %85 = arith.addf %82, %84 : vector<32x256xf32>
    %cst_12 = arith.constant 0.000000e+00 : f32
    %86 = vector.broadcast %cst_12 : f32 to vector<32x256xf32>
    %87 = arith.subf %86, %85 : vector<32x256xf32>
    %88 = math.exp %87 : vector<32x256xf32>
    %cst_13 = arith.constant 1.000000e+00 : f32
    %89 = vector.broadcast %cst_13 : f32 to vector<32x256xf32>
    %90 = arith.addf %89, %88 : vector<32x256xf32>
    %91 = tpu.reciprocal %90 {approx = true} : vector<32x256xf32> -> vector<32x256xf32>
    %92 = arith.mulf %85, %91 : vector<32x256xf32>
    %c0_14 = arith.constant 0 : index
    %c19 = arith.constant 19 : index
    %93 = vector.load %arg2[%c0_14, %c19] : memref<32x65xf32, #tpu.memory_space<vmem>>, vector<8x32xf32>
    %94 = arith.truncf %93 : vector<8x32xf32> to vector<8x32xbf16>
    %95 = arith.truncf %92 : vector<32x256xf32> to vector<32x256xbf16>
    %cst_15 = arith.constant dense<0.000000e+00> : vector<8x256xf32>
    %96 = tpu.matmul %94, %95, %cst_15 {dimension_numbers = #tpu.dot_dimension_numbers<[1], [0], [0], [1], [0, 0, 1, 1], [], []>} : vector<8x32xbf16>, vector<32x256xbf16>, vector<8x256xf32> -> vector<8x256xf32>
    %c0_16 = arith.constant 0 : index
    %c51 = arith.constant 51 : index
    %97 = vector.load %arg2[%c0_16, %c51] : memref<32x65xf32, #tpu.memory_space<vmem>>, vector<8x1xf32>
    %98 = vector.broadcast %97 : vector<8x1xf32> to vector<8x256xf32>
    %99 = arith.addf %96, %98 : vector<8x256xf32>
    %cst_17 = arith.constant dense<0.000000e+00> : vector<8xf32>
    %100 = vector.multi_reduction <add>, %99, %cst_17 [1] : vector<8x256xf32> to vector<8xf32>
    %101 = vector.shape_cast %100 : vector<8xf32> to vector<8x1xf32>
    %cst_18 = arith.constant 3.906250e-03 : f32
    %102 = vector.broadcast %cst_18 : f32 to vector<8x1xf32>
    %103 = arith.mulf %101, %102 : vector<8x1xf32>
    %c0_19 = arith.constant 0 : index
    %c52 = arith.constant 52 : index
    %104 = vector.load %arg2[%c0_19, %c52] : memref<32x65xf32, #tpu.memory_space<vmem>>, vector<8x4xf32>
    %105 = vector.broadcast %103 : vector<8x1xf32> to vector<8x4xf32>
    %106 = arith.mulf %104, %105 : vector<8x4xf32>
    %cst_20 = arith.constant dense<0.000000e+00> : vector<4xf32>
    %107 = vector.multi_reduction <add>, %106, %cst_20 [0] : vector<8x4xf32> to vector<4xf32>
    %108 = vector.shape_cast %107 : vector<4xf32> to vector<1x4xf32>
    %c0_21 = arith.constant 0 : index
    %c56 = arith.constant 56 : index
    %109 = vector.load %arg2[%c0_21, %c56] : memref<32x65xf32, #tpu.memory_space<vmem>>, vector<1x4xf32>
    %110 = arith.addf %108, %109 : vector<1x4xf32>
    %cst_22 = arith.constant 0.000000e+00 : f32
    %111 = vector.broadcast %cst_22 : f32 to vector<1x4xf32>
    %112 = arith.maximumf %110, %111 : vector<1x4xf32>
    %c0_23 = arith.constant 0 : index
    %c60 = arith.constant 60 : index
    %113 = vector.load %arg2[%c0_23, %c60] : memref<32x65xf32, #tpu.memory_space<vmem>>, vector<8x4xf32>
    %114 = vector.broadcast %112 : vector<1x4xf32> to vector<8x4xf32>
    %115 = arith.mulf %113, %114 : vector<8x4xf32>
    %cst_24 = arith.constant dense<0.000000e+00> : vector<8xf32>
    %116 = vector.multi_reduction <add>, %115, %cst_24 [1] : vector<8x4xf32> to vector<8xf32>
    %117 = vector.shape_cast %116 : vector<8xf32> to vector<8x1xf32>
    %c0_25 = arith.constant 0 : index
    %c64 = arith.constant 64 : index
    %118 = vector.load %arg2[%c0_25, %c64] : memref<32x65xf32, #tpu.memory_space<vmem>>, vector<8x1xf32>
    %119 = arith.addf %117, %118 : vector<8x1xf32>
    %cst_26 = arith.constant 0.000000e+00 : f32
    %120 = vector.broadcast %cst_26 : f32 to vector<8x1xf32>
    %121 = arith.subf %120, %119 : vector<8x1xf32>
    %122 = math.exp %121 : vector<8x1xf32>
    %cst_27 = arith.constant 1.000000e+00 : f32
    %123 = vector.broadcast %cst_27 : f32 to vector<8x1xf32>
    %124 = arith.addf %123, %122 : vector<8x1xf32>
    %cst_28 = arith.constant 1.000000e+00 : f32
    %125 = vector.broadcast %cst_28 : f32 to vector<8x1xf32>
    %126 = arith.divf %125, %124 : vector<8x1xf32>
    %127 = vector.broadcast %126 : vector<8x1xf32> to vector<8x256xf32>
    %128 = arith.mulf %99, %127 : vector<8x256xf32>
    %129 = arith.addf %1, %128 : vector<8x256xf32>
    %c0_29 = arith.constant 0 : index
    %c0_30 = arith.constant 0 : index
    %c0_31 = arith.constant 0 : index
    %130 = vector.load %arg3[%c0_29, %c0_30, %c0_31] : memref<1x8x256xf32, #tpu.memory_space<vmem>>, vector<1x8x256xf32>
    %131 = vector.shape_cast %130 : vector<1x8x256xf32> to vector<8x256xf32>
    %132 = vector.shape_cast %129 : vector<8x256xf32> to vector<1x8x256xf32>
    tpu.vector_store %arg3[%c0_29, %c0_30, %c0_31], %132 {strides = array<i32>} : memref<1x8x256xf32, #tpu.memory_space<vmem>>, vector<1x8x256xf32>,
    return
  }
  func.func @transform_0(%arg0: i32) -> (i32, i32, i32) {
    %c0_i32 = arith.constant 0 : i32
    %c0_i32_0 = arith.constant 0 : i32
    %c0_i32_1 = arith.constant 0 : i32
    return %arg0, %c0_i32, %c0_i32_0 : i32, i32, i32
  }
  func.func @transform_1(%arg0: i32) -> (i32, i32) {
    %c0_i32 = arith.constant 0 : i32
    %c0_i32_0 = arith.constant 0 : i32
    %c0_i32_1 = arith.constant 0 : i32
    return %c0_i32, %c0_i32_0 : i32, i32
  }
  func.func @transform_2(%arg0: i32) -> (i32, i32, i32) {
    %c0_i32 = arith.constant 0 : i32
    %c0_i32_0 = arith.constant 0 : i32
    %c0_i32_1 = arith.constant 0 : i32
    return %arg0, %c0_i32, %c0_i32_0 : i32, i32, i32
  }
}

</mosaic_0001>

<bundles_post_ra>
// kernel: tpu_custom_call.1
= control target key start
LH: loop header
LB: loop body
LE: loop exit
PB: predicated region body
PF: predicated region fallthrough
CT: control target
= control target key end

     0   :  { %7 = vsyncpa [#allocation3], 0  ;;  %s2094_s0 = inlined_call_operand.hbm [shape: f32[2,8,256], index: 0, kind: input, shape index: {}]   ;;  %s2095_s1 = inlined_call_operand.hbm [shape: f32[32,65], index: 1, kind: input, shape index: {}]   ;;  %s2096_s2 = inlined_call_operand.hbm [shape: f32[2,8,256], index: 2, kind: output, shape index: {}]  }
   0x1   :  { %9 = vsyncpa [#allocation3 + $0x1], 0 }
   0x2   :  { %10 = vsyncpa [#allocation6], 0 }
   0x3   :  { %11 = vsyncpa [#allocation4], 0 }
   0x4   :  { %13 = vsyncpa [#allocation4 + $0x1], 0  ;;  %s1425_s9 = smov 0   ;;  %s1427_s10 = smov 0  }
   0x5   :  { %s1429_s11 = smov 0   ;;  %s1431_s12 = smov 0  }
   0x6 LB: > { %s108_s15 = sshll.u32 %s2095_s1, 4  ;;  %s1449_s16 = sadd.s32 4294967295, %s1383_s12   ;;  %s1383_s12 = sphi %s1431_s12, %s2157_s12   ;;  %s1379_s11 = sphi %s1429_s11, %s2156_s11   ;;  %s1375_s10 = sphi %s1427_s10, %s2155_s10   ;;  %s1371_s9 = sphi %s1425_s9, %s2154_s9   ;;  %s109_s15 = int_to_ptr.hbm [resolvable:$true] %s108_s15 }
   0x7   : > { %p1030_p0 = scmp.ge.s32.totalorder %s1383_s12, 1  ;;  %p40_p1 = scmp.eq.s32.totalorder %s1449_s16, 0 }
   0x8   : > { %p97_p2 = scmp.lt.s32.totalorder %s1383_s12, 3  ;;  %s1385_s18 = smov [#allocation5]  }
   0x9   : > { %s110_s19 = sshll.u32 %s1385_s18, 4  ;;  %s1386_s20 = smov 128   ;;  %s111_s19 = int_to_ptr.vmem [resolvable:$true] %s110_s19 }
   0xa   : > { %p1454_p3 = pnand %p1030_p0, %p97_p2  ;;  %s1387_s21 = smov 8  }
   0xb   : > { %s1029_s22 = sadd.s32 4294967294, %s1383_s12   ;;  %s1465_s23 = sadd.s32 1, %s1383_s12  }
   0xc   : > { %p1067_p4 = pneg %p1454_p3  ;;  %s26_s24 = sadd.s32 1, %s1379_s11 }
   0xd   : > { %s23_s25 = ssub.s32 %s1383_s12, %s1465_s23  ;;  %p33_p7 = scmp.ne.s32.totalorder %s1379_s11, %s1375_s10 }
   0xe   : > { %p1068_p6 = pnand %p1067_p4, %p40_p1  ;;  %p24_p8 = scmp.eq.s32.totalorder %s23_s25, 0 }
   0xf   : > { %p34_p9 = scmp.eq.s32.totalorder %s1383_s12, 0  ;;  %p39_p10 = scmp.ne.s32.totalorder %s1375_s10, %s1371_s9 }
  0x10   : > { %1070 = dma.hbm_to_vmem [thread:$0]  (!%p1068_p6), %s109_s15, 512, %s111_s19, [#allocation6], %s1386_s20, %s1386_s20, %s1387_s21  }
  0x11   : > { %p84_p11 = scmp.eq.s32.totalorder %s1449_s16, 1  ;;  %p1481_p12 = por %p40_p1, %p39_p10 }
  0x12   : > { %s1477_s26 = scalar_select %p24_p8, %s1379_s11, %s26_s24  }
  0x13   : > { %p1485_p13 = por %p84_p11, %p33_p7  ;;  %p90_p0 = scmp.eq.s32.totalorder %s1029_s22, 1 }
  0x14   : > { %p35_p2 = por %p34_p9, %p33_p7  ;;  %s124_s29 = sand.u32 1, %s1379_s11  }
  0x15   : > { %p1490_p4 = por %p90_p0, %p39_p10  ;;  %p1080_p6 = scmp.lt.s32.totalorder %s1383_s12, 2 }
  0x16   : > { %s1033_s3 = sshll.u32 %s124_s29, 4  ;;  %s1057_s4 = sshll.u32 %s1383_s12, 4 }
  0x17   : > { %s133_s7 = scalar_lea.hbm %s2094_s0, %s1057_s4  ;;  %s128_s13 = scalar_lea.vmem [#allocation2], %s1033_s3 }
  0x18   : > { %s135_s8 = sshll.u32 %s133_s7, 4  ;;  %s137_s14 = sshll.u32 %s128_s13, 4  ;;  %s136_s8 = int_to_ptr.hbm [resolvable:$true] %s135_s8  ;;  %s138_s14 = int_to_ptr.vmem [resolvable:$true] %s137_s14 }
  0x19   : > { %p1499_p8 = pnand %p1080_p6, %p35_p2  ;;  %s125_s18 = scalar_lea.sflag [#allocation3], %s124_s29 }
  0x1a   : > { %s1283_s19 = sshra.s32 %s136_s8, 4  ;;  %s1290_s24 = scalar_lea.hbm %s2094_s0, 32  ;;  %s1284_s19 = int_to_ptr.hbm [resolvable:$true] %s1283_s19 }
  0x1b   : > { %s1285_s20 = scalar_lea.hbm %s1284_s19, 16  ;;  %p1287_p9 = pneg %p1499_p8 }
  0x1c   : > { %p1286_p7 = scmp.ne.s32.totalorder %s1284_s19, %s1285_s20  ;;  %p1291_p0 = scmp.lt.s32.totalorder %s1284_s19, %s2094_s0 }
  0x1d   : > { %p1292_p2 = scmp.lt.s32.totalorder %s1290_s24, %s1285_s20 }
  0x1e   : > { %p1288_p10 = pnand %p1287_p9, %p1286_p7 }
  0x1f   : > { %p1293_p6 = por %p1292_p2, %p1291_p0 }
  0x20   : > { %p1289_p11 = pneg %p1288_p10 }
  0x22   : > { %p1294_p5 = pnand %p1293_p6, %p1289_p11 }
  0x24   : > { %1297 = shalt.err (!%p1294_p5)
}
  0x25   : > { %1074 = dma.hbm_to_vmem [thread:$0]  (!%p1499_p8), %s136_s8, 256, %s138_s14, %s125_s18  }
  0x26   : > { %146 = sbr.rel (%p1454_p3) target bundleno = 1299 (0x513), region = 28 }
  0x2b   : > { %s1516_s29 = sand.u32 1, %s1375_s10  }
  0x2c   : > { %s1037_s4 = sshll.u32 %s1516_s29, 4  ;;  %s149_s5 = scalar_lea.sflag [#allocation3], %s1516_s29 }
  0x2d   : > { %s1522_s6 = scalar_lea.vmem [#allocation2], %s1037_s4 }
  0x2e   : > { %1358 = dma.done.wait (%p1481_p12), %s149_s5, 256  }
  0x2f   : > { %1360 = vsyncadd (%p1481_p12), %s149_s5, 4294967040 }
  0x30   : > { %1362 = dma.done.wait (%p40_p1), [#allocation6], 512  }
  0x31   : > { %1364 = vsyncadd (%p40_p1), [#allocation6], 4294966784  ;;  %v1388_v0 = vmov 8   ;;  %v1389_v1 = vmov 10   ;;  %v1533_v2 = vld [vmem:[#allocation5 + $0x10] sm:$0xff]  ;;  %v1535_v3 = vld [vmem:[#allocation5] sm:$0xff] }
  0x32   : > { %1141 = vset.pattern.permute.xlu1 %v1388_v0  ;;  %1140 = vset.pattern.permute.xlu0 %v1388_v0  ;;  %2115 = vst [vmem:[#allocation11_spill] sm:$0xff] %v1533_v2  ;;  %v180_v4 = vld [vmem:[%s1522_s6] sm:$0xff]  ;;  %vm217_vm0 = vcmask 1043456   ;;  %v181_v6 = vld [vmem:[%s1522_s6 + $0x8] sm:$0xff]  ;;  %vm210_vm1 = vcmask 64512   ;;  %v1390_v13 = vmov 15  }
  0x33   : > { %1143 = vset.pattern.permute.xlu2 %v1389_v1  ;;  %2116 = vst [vmem:[#allocation12_spill] sm:$0xff] %v1535_v3  ;;  %202 = vperm.xlu0 %1140, %v1533_v2   ;;  %v188_v5 = vpack.c.bf16 %v180_v4, %v180_v4  ;;  %v1541_v7 = vld [vmem:[#allocation5 + $0x8] sm:$0xff]  ;;  %v189_v8 = vpack.c.bf16 %v181_v6, %v181_v6  ;;  %v1546_v12 = vld [vmem:[#allocation5 + $0x18] sm:$0xff]  ;;  %v1391_v14 = vmov 11   ;;  %v1392_v15 = vmov 9   ;;  %s1398_s17 = smov 1  }
  0x34   : > { %192 = vperm.xlu1 %1141, %v1535_v3   ;;  %2117 = vst [vmem:[#allocation13_spill] sm:$0xff] %v1541_v7  ;;  %438 = vperm.xlu2 %1143, %v1533_v2   ;;  %v186_v10 = vpack.c.bf16 %v1541_v7, %v1535_v3  ;;  %v187_v16 = vpack.c.bf16 %v1546_v12, %v1533_v2  ;;  %v1393_v17 = vmov 16   ;;  %v1394_v18 = vmov 17   ;;  %s1399_s27 = smov 127   ;;  %s1401_s7 = smov 16  }
  0x35   : > { %v219_v9 = vsel %vm217_vm0, %v188_v5, 0  ;;  %v222_v11 = vsel %vm217_vm0, %v189_v8, 0  ;;  %2118 = vst [vmem:[#allocation14_spill] sm:$0xff] %v1546_v12  ;;  %v1395_v19 = vmov 12   ;;  %v1396_v20 = vmov 13   ;;  %s1402_s8 = smov 112  }
  0x36   : > { %231 = vmatpush.bf16.msra.mxu0 %v219_v9  ;;  %250 = vmatpush.bf16.msra.mxu1 %v222_v11  ;;  %v1397_v23 = vmov 14   ;;  %s1404_s13 = smov 109   ;;  %vm837_vm12 = vcmask 261120   ;;  %s1406_s14 = smov 124   ;;  %vm872_vm13 = vcmask 458144   ;;  %vm897_vm14 = vcmask 31744  }
  0x37   : > { %s1407_s15 = smov 8   ;;  %s1408_s18 = smov 68  }
  0x38   : > { %s1058_s19 = sshll.u32 %s1449_s16, 4  ;;  %s178_s24 = scalar_lea.vmem [#allocation7], %s1037_s4 }
  0x39   : > { %1040 = vmatmul.msk.bf16.vlgmr.msra.gmra.mxu0 %vm210_vm1, %v186_v10  ;;  %1042 = vmatmul.msk.bf16.vlgmr.msra.gmra.mxu1 %vm210_vm1, %v186_v10  ;;  %s944_s22 = scalar_lea.hbm %s2096_s2, %s1058_s19  ;;  %s946_s25 = sshll.u32 %s178_s24, 4  ;;  %s947_s25 = int_to_ptr.vmem [resolvable:$true] %s946_s25 }
  0x3a   : > { %s948_s3 = sshll.u32 %s944_s22, 4  ;;  %s933_s16 = scalar_lea.sflag [#allocation4], %s1516_s29  ;;  %s949_s3 = int_to_ptr.hbm [resolvable:$true] %s948_s3 }
  0x3b   : > { %207 = vperm.xlu0 %1140, %v1546_v12   ;;  %s1327_s5 = sshra.s32 %s949_s3, 4  ;;  %s1328_s5 = int_to_ptr.hbm [resolvable:$true] %s1327_s5 }
  0x3c   : > { %197 = vperm.xlu1 %1141, %v1541_v7   ;;  %1148 = vset.pattern.permute.xlu2 %v1390_v13  ;;  %p1334_p12 = scmp.lt.s32.totalorder %s1328_s5, %s2096_s2 }
  0x3d   : > { %590 = vperm.xlu2 %1148, %v1533_v2  }
  0x43   : > { %1145 = vset.pattern.permute.xlu0 %v1391_v14 }
  0x44   : > { %1142 = vset.pattern.permute.xlu1 %v1392_v15  ;;  %470 = vperm.xlu0 %1145, %v1533_v2  }
  0x45   : > { %418 = vperm.xlu1 %1142, %v1546_v12   ;;  %1150 = vset.pattern.permute.xlu2 %v1393_v17 }
  0x46   : > { %614 = vperm.xlu2 %1150, %v1533_v2  }
  0x49   : > { %1041 = vmatmul.msk.bf16.gmra.mxu0 %vm210_vm1, %v187_v16  ;;  %1043 = vmatmul.msk.bf16.gmra.mxu1 %vm210_vm1, %v187_v16 }
  0x4c   : > { %1146 = vset.pattern.permute.xlu0 %v1392_v15 }
  0x4d   : > { %1144 = vset.pattern.permute.xlu1 %v1389_v1  ;;  %414 = vperm.xlu0 %1146, %v1533_v2  }
  0x4e   : > { %442 = vperm.xlu1 %1144, %v1546_v12   ;;  %1152 = vset.pattern.permute.xlu2 %v1389_v1 }
  0x4f   : > { %430 = vperm.xlu2 %1152, %v1535_v3  }
  0x55   : > { %406 = vperm.xlu0 %1146, %v1535_v3  }
  0x56   : > { %1147 = vset.pattern.permute.xlu1 %v1391_v14 }
  0x57   : > { %474 = vperm.xlu1 %1147, %v1546_v12   ;;  %1154 = vset.pattern.permute.xlu2 %v1394_v18 }
  0x58   : > { %646 = vperm.xlu2 %1154, %v1533_v2  }
  0x5d   : > { %1155 = vset.pattern.permute.xlu0 %v1394_v18 }
  0x5e   : > { %650 = vperm.xlu0 %1155, %v1546_v12  }
  0x5f   : > { %1149 = vset.pattern.permute.xlu1 %v1390_v13 }
  0x60   : > { %594 = vperm.xlu1 %1149, %v1546_v12   ;;  %1158 = vset.pattern.permute.xlu2 %v1391_v14 }
  0x61   : > { %466 = vperm.xlu2 %1158, %v1541_v7  }
  0x66   : > { %1156 = vset.pattern.permute.xlu0 %v1393_v17 }
  0x67   : > { %618 = vperm.xlu0 %1156, %v1546_v12  }
  0x68   : > { %1151 = vset.pattern.permute.xlu1 %v1392_v15 }
  0x69   : > { %410 = vperm.xlu1 %1151, %v1541_v7   ;;  %1160 = vset.pattern.permute.xlu2 %v1390_v13 }
  0x6a   : > { %586 = vperm.xlu2 %1160, %v1541_v7  }
  0x6f   : > { %606 = vperm.xlu0 %1156, %v1535_v3  }
  0x71   : > { %1153 = vset.pattern.permute.xlu1 %v1389_v1 }
  0x72   : > { %434 = vperm.xlu1 %1153, %v1541_v7   ;;  %1162 = vset.pattern.permute.xlu2 %v1394_v18 }
  0x73   : > { %638 = vperm.xlu2 %1162, %v1535_v3  }
  0x77   : > { %1165 = vset.pattern.permute.xlu0 %v1395_v19 }
  0x78   : > { %506 = vperm.xlu0 %1165, %v1546_v12  }
  0x7a   : > { %1157 = vset.pattern.permute.xlu1 %v1391_v14 }
  0x7b   : > { %462 = vperm.xlu1 %1157, %v1535_v3   ;;  %1164 = vset.pattern.permute.xlu2 %v1395_v19 }
  0x7c   : > { %502 = vperm.xlu2 %1164, %v1533_v2  }
  0x80   : > { %1172 = vset.pattern.permute.xlu0 %v1396_v20 }
  0x81   : > { %518 = vperm.xlu0 %1172, %v1535_v3  }
  0x83   : > { %1159 = vset.pattern.permute.xlu1 %v1390_v13 }
  0x84   : > { %582 = vperm.xlu1 %1159, %v1535_v3   ;;  %1167 = vset.pattern.permute.xlu2 %v1396_v20 }
  0x85   : > { %530 = vperm.xlu2 %1167, %v1546_v12  }
  0x8c   : > { %1161 = vset.pattern.permute.xlu1 %v1393_v17 }
  0x8d   : > { %610 = vperm.xlu1 %1161, %v1541_v7   ;;  %1169 = vset.pattern.permute.xlu2 %v1397_v23 }
  0x8e   : > { %v1585_v21 = vpop.permute.xlu2 %438  ;;  %562 = vperm.xlu2 %1169, %v1546_v12  }
  0x95   : > { %1163 = vset.pattern.permute.xlu1 %v1394_v18 }
  0x96   : > { %642 = vperm.xlu1 %1163, %v1541_v7   ;;  %1171 = vset.pattern.permute.xlu2 %v1395_v19 }
  0x97   : > { %v1588_v22 = vpop.permute.xlu2 %590  ;;  %498 = vperm.xlu2 %1171, %v1541_v7  }
  0x9e   : > { %1166 = vset.pattern.permute.xlu1 %v1396_v20 }
  0x9f   : > { %526 = vperm.xlu1 %1166, %v1533_v2   ;;  %1175 = vset.pattern.permute.xlu2 %v1397_v23 }
  0xa0   : > { %v1593_v24 = vpop.permute.xlu2 %614 }
  0xa5   : > { %v203_v27 = vpop.permute.xlu0 %202 }
  0xa6   : > { %v193_v25 = vpop.permute.xlu1 %192 }
  0xa7   : > { %1168 = vset.pattern.permute.xlu1 %v1397_v23 }
  0xa8   : > { %558 = vperm.xlu1 %1168, %v1533_v2  }
  0xa9   : > { %v1598_v26 = vpop.permute.xlu2 %430 }
  0xad   : > { %v208_v30 = vpop.permute.xlu0 %207 }
  0xae   : > { %v198_v28 = vpop.permute.xlu1 %197 }
  0xb0   : > { %1170 = vset.pattern.permute.xlu1 %v1395_v19 }
  0xb1   : > { %494 = vperm.xlu1 %1170, %v1535_v3  }
  0xb2   : > { %v1602_v29 = vpop.permute.xlu2 %646 }
  0xb3   : > { %2119 = vst [vmem:[#allocation15_spill] sm:$0xff] %v1602_v29 }
  0xb6   : > { %v233_v31 = vpop.f32.mrf.mxu0  ;;  %v252_v33 = vpop.f32.mrf.mxu1 }
  0xb7   : > { %v234_v32 = vadd.f32 %v233_v31, %v193_v25  ;;  %v1604_v34 = vpop.permute.xlu1 %418  ;;  %v253_v35 = vadd.f32 %v252_v33, %v193_v25  ;;  %v1608_v44 = vpop.permute.xlu0 %470 }
  0xb9   : > { %1173 = vset.pattern.permute.xlu1 %v1396_v20  ;;  %v262_v36 = vsub.f32 0.0, %v234_v32  ;;  %v263_v37 = vsub.f32 0.0, %v253_v35 }
  0xbb   : > { %v270_v38 = vmul.f32 1.442695, %v262_v36  ;;  %v272_v39 = vmul.f32 1.442695, %v263_v37  ;;  %v1606_v40 = vpop.permute.xlu2 %466 }
  0xbd   : > { %1182 = vpow2.f32 %v270_v38 }
  0xbe   : > { %1184 = vpow2.f32 %v272_v39  ;;  %v235_v41 = vpop.f32.mrf.mxu0  ;;  %v254_v43 = vpop.f32.mrf.mxu1 }
  0xbf   : > { %v236_v42 = vadd.f32 %v235_v41, %v198_v28  ;;  %v1610_v45 = vadd.f32 %v254_v43, %v198_v28  ;;  %v1619_v62 = vpop.permute.xlu0 %414 }
  0xc0   : > { %v1612_v46 = vpop.permute.xlu1 %442 }
  0xc1   : > { %v264_v47 = vsub.f32 0.0, %v236_v42  ;;  %v265_v48 = vsub.f32 0.0, %v1610_v45 }
  0xc3   : > { %v1183_v49 = vpop.eup %1182  ;;  %v274_v50 = vmul.f32 1.442695, %v264_v47  ;;  %v276_v53 = vmul.f32 1.442695, %v265_v48 }
  0xc4   : > { %v1185_v51 = vpop.eup %1184  ;;  %v286_v52 = vadd.f32 1.0, %v1183_v49  ;;  %v1615_v56 = vpop.permute.xlu2 %586 }
  0xc5   : > { %v287_v54 = vadd.f32 1.0, %v1185_v51  ;;  %1186 = vpow2.f32 %v274_v50 }
  0xc6   : > { %1188 = vrcp.f32 %v286_v52  ;;  %v238_v55 = vpop.f32.mrf.mxu0  ;;  %v257_v58 = vpop.f32.mrf.mxu1 }
  0xc7   : > { %1190 = vrcp.f32 %v287_v54  ;;  %v239_v57 = vadd.f32 %v238_v55, %v203_v27  ;;  %v258_v59 = vadd.f32 %v257_v58, %v203_v27  ;;  %v1641_v36 = vpop.permute.xlu0 %406 }
  0xc8   : > { %1192 = vpow2.f32 %v276_v53 }
  0xc9   : > { %v1617_v60 = vpop.permute.xlu1 %474  ;;  %v266_v61 = vsub.f32 0.0, %v239_v57  ;;  %v267_v63 = vsub.f32 0.0, %v258_v59 }
  0xcb   : > { %v1187_v0 = vpop.eup %1186  ;;  %v278_v1 = vmul.f32 1.442695, %v266_v61  ;;  %v280_v6 = vmul.f32 1.442695, %v267_v63 }
  0xcc   : > { %v1189_v4 = vpop.eup %1188  ;;  %v288_v5 = vadd.f32 1.0, %v1187_v0 }
  0xcd   : > { %v1191_v8 = vpop.eup %1190  ;;  %v1621_v9 = vmul.f32 %v1189_v4, %v234_v32  ;;  %1194 = vpow2.f32 %v278_v1  ;;  %v1633_v19 = vpop.permute.xlu2 %638 }
  0xce   : > { %v1193_v10 = vpop.eup %1192  ;;  %v1623_v11 = vmul.f32 %v1191_v8, %v253_v35  ;;  %1196 = vrcp.f32 %v288_v5  ;;  %v240_v13 = vpop.f32.mrf.mxu0 }
  0xcf   : > { %v289_v14 = vadd.f32 1.0, %v1193_v10  ;;  %1198 = vpow2.f32 %v280_v6  ;;  %v241_v15 = vadd.f32 %v240_v13, %v208_v30  ;;  %v259_v16 = vpop.f32.mrf.mxu1  ;;  %339 = vrot.lane.b32.xlu2 %v1621_v9, %s1398_s17  ;;  %v1629_v17 = vmul.f32 %v1598_v26, %v1621_v9 }
  0xd0   : > { %v260_v18 = vadd.f32 %v259_v16, %v208_v30  ;;  %347 = vrot.lane.b32.xlu1 %v1623_v11, %s1398_s17  ;;  %v1637_v20 = vmul.f32 %v1598_v26, %v1623_v11  ;;  %v1660_v53 = vpop.permute.xlu0 %650 }
  0xd1   : > { %1200 = vrcp.f32 %v289_v14  ;;  %v268_v25 = vsub.f32 0.0, %v241_v15  ;;  %2121 = vst [vmem:[#allocation17_spill] sm:$0xff] %v1660_v53 }
  0xd2   : > { %v1639_v27 = vpop.permute.xlu1 %594  ;;  %v269_v28 = vsub.f32 0.0, %v260_v18 }
  0xd3   : > { %2120 = vst [vmem:[#allocation16_spill] sm:$0xff] %v1639_v27  ;;  %v1195_v31 = vpop.eup %1194  ;;  %v282_v32 = vmul.f32 1.442695, %v268_v25 }
  0xd4   : > { %v1197_v33 = vpop.eup %1196  ;;  %v290_v35 = vadd.f32 1.0, %v1195_v31  ;;  %v284_v30 = vmul.f32 1.442695, %v269_v28 }
  0xd5   : > { %v1199_v37 = vpop.eup %1198  ;;  %v1643_v38 = vmul.f32 %v1197_v33, %v236_v42  ;;  %1202 = vpow2.f32 %v282_v32  ;;  %v310_v33 = vlaneseq }
  0xd6   : > { %1204 = vrcp.f32 %v290_v35  ;;  %v291_v39 = vadd.f32 1.0, %v1199_v37  ;;  %v1656_v43 = vpop.permute.xlu2 %502 }
  0xd7   : > { %v1201_v26 = vpop.eup %1200  ;;  %1206 = vpow2.f32 %v284_v30  ;;  %341 = vrot.lane.b32.xlu0 %v1643_v38, %s1398_s17  ;;  %v1737_v30 = vand.u32 127, %v310_v33 }
  0xd8   : > { %v1648_v41 = vmul.f32 %v1201_v26, %v1610_v45  ;;  %1208 = vrcp.f32 %v291_v39  ;;  %372 = vrot.lane.b32.xlu1 %v1621_v9, %s1399_s27 }
  0xd9   : > { %v1740_v39 = vadd.s32 128, %v1737_v30  ;;  %vm355_vm4 = vcmp.lt.s32.totalorder %v1737_v30, 1  ;;  %vm388_vm6 = vcmp.lt.s32.totalorder %v1737_v30, 127  ;;  %vm327_vm8 = vcmp.ge.s32.totalorder %v1737_v30, 16 }
  0xda   : > { %349 = vrot.lane.b32.xlu2 %v1648_v41, %s1398_s17  ;;  %vm685_vm9 = vcmp.lt.s32.totalorder %v1737_v30, 16  ;;  %vm726_vm11 = vcmp.lt.s32.totalorder %v1737_v30, 112 }
  0xdb   : > { %v1654_v42 = vpop.permute.xlu1 %410  ;;  %v1203_v47 = vpop.eup %1202  ;;  %2126 = vst [vmem:[#allocation22_spill] sm:$0xff] %v1740_v39 }
  0xdc   : > { %v1205_v48 = vpop.eup %1204  ;;  %v292_v49 = vadd.f32 1.0, %v1203_v47 }
  0xdd   : > { %v1207_v50 = vpop.eup %1206  ;;  %v1658_v51 = vmul.f32 %v1205_v48, %v239_v57  ;;  %v313_v48 = vand.u32 15, %v1737_v30 }
  0xde   : > { %v1209_v45 = vpop.eup %1208  ;;  %1210 = vrcp.f32 %v292_v49  ;;  %v293_v52 = vadd.f32 1.0, %v1207_v50  ;;  %v314_v49 = vand.u32 15, %v1740_v39 }
  0xdf   : > { %v1662_v54 = vmul.f32 %v1209_v45, %v258_v59  ;;  %v1666_v55 = vmul.f32 %v1593_v24, %v1658_v51  ;;  %v531_v61 = vpop.permute.xlu2 %530  ;;  %vm315_vm2 = vcmp.ne.s32.totalorder %v313_v48, 0  ;;  %vm321_vm7 = vcmp.ne.s32.totalorder %v313_v48, 15 }
  0xe0   : > { %1212 = vrcp.f32 %v293_v52  ;;  %380 = vrot.lane.b32.xlu1 %v1623_v11, %s1399_s27  ;;  %vm316_vm3 = vcmp.ne.s32.totalorder %v314_v49, 0  ;;  %v2100_v52 = vmov 0.0   ;;  %vm322_vm5 = vcmp.ne.s32.totalorder %v314_v49, 15 }
  0xe1   : > { %2122 = vst [vmem:[#allocation18_spill] sm:$0xff] %v1666_v55  ;;  %351 = vrot.lane.b32.xlu0 %v1662_v54, %s1398_s17  ;;  %v1674_v57 = vmul.f32 %v1593_v24, %v1662_v54  ;;  %v1689_v24 = vpop.permute.xlu0 %618 }
  0xe2   : > { %374 = vrot.lane.b32.xlu2 %v1643_v38, %s1399_s27 }
  0xe3   : > { %2123 = vst [vmem:[#allocation19_spill] sm:$0xff] %v1674_v57 }
  0xe4   : > { %v1211_v58 = vpop.eup %1210  ;;  %v1678_v59 = vpop.permute.xlu1 %434 }
  0xe5   : > { %v1680_v63 = vmul.f32 %v1211_v58, %v241_v15  ;;  %v1748_v58 = vsel %vm315_vm2, 1.0, %v2100_v52 }
  0xe6   : > { %v1213_v0 = vpop.eup %1212 }
  0xe7   : > { %v309_v1 = vmul.f32 %v1213_v0, %v260_v18  ;;  %v1683_v4 = vmul.f32 %v531_v61, %v1680_v63  ;;  %v1687_v5 = vmul.f32 %v1612_v46, %v1680_v63 }
  0xe8   : > { %384 = vrot.lane.b32.xlu1 %v1662_v54, %s1399_s27  ;;  %v1731_v28 = vpop.permute.xlu2 %562 }
  0xe9   : > { %v1694_v6 = vmul.f32 %v1689_v24, %v309_v1  ;;  %v1696_v8 = vmul.f32 %v531_v61, %v309_v1  ;;  %378 = vrot.lane.b32.xlu0 %v1680_v63, %s1399_s27  ;;  %v1701_v10 = vmul.f32 %v1612_v46, %v309_v1  ;;  %v1735_v35 = vpop.permute.xlu0 %606  ;;  %v1751_v61 = vsel %vm316_vm3, 1.0, %v2100_v52 }
  0xea   : > { %382 = vrot.lane.b32.xlu2 %v1648_v41, %s1399_s27 }
  0xeb   : > { %2124 = vst [vmem:[#allocation20_spill] sm:$0xff] %v1694_v6  ;;  %v2127_v6 = vmov 0.0  }
  0xec   : > { %2125 = vst [vmem:[#allocation21_spill] sm:$0xff] %v1701_v10  ;;  %v1766_v57 = vsel %vm322_vm5, 1.0, %v2127_v6 }
  0xed   : > { %v1705_v13 = vpop.permute.xlu1 %462 }
  0xf0   : > { %353 = vrot.lane.b32.xlu1 %v309_v1, %s1398_s17 }
  0xf1   : > { %v1742_v26 = vpop.permute.xlu0 %506 }
  0xf2   : > { %343 = vrot.lane.b32.xlu2 %v1658_v51, %s1398_s17 }
  0xf6   : > { %v1710_v14 = vpop.permute.xlu1 %582 }
  0xf8   : > { %522 = vperm.xlu1 %1173, %v1541_v7  }
  0xf9   : > { %v519_v45 = vpop.permute.xlu0 %518 }
  0xfa   : > { %376 = vrot.lane.b32.xlu2 %v1658_v51, %s1399_s27  ;;  %v534_v52 = vmul.f32 %v519_v45, %v1623_v11 }
  0xff   : > { %v1715_v15 = vpop.permute.xlu1 %610 }
 0x100   : > { %1174 = vset.pattern.permute.xlu1 %v1397_v23  ;;  %v499_v23 = vpop.permute.xlu2 %498 }
 0x101   : > { %550 = vperm.xlu1 %1174, %v1535_v3  }
 0x102   : > { %345 = vrot.lane.b32.xlu2 %v1680_v63, %s1398_s17  ;;  %s1329_s17 = scalar_lea.hbm %s1328_s5, 16 }
 0x103   : > { %p1330_p1 = scmp.ne.s32.totalorder %s1328_s5, %s1329_s17 }
 0x105   : > { %p1331_p3 = pnand %p1330_p1, %p1485_p13 }
 0x107   : > { %p1332_p5 = pneg %p1331_p3 }
 0x108   : > { %v1721_v46 = vpop.permute.xlu1 %642 }
 0x10a   : > { %386 = vrot.lane.b32.xlu2 %v309_v1, %s1399_s27 }
 0x111   : > { %v527_v16 = vpop.permute.xlu1 %526 }
 0x112   : > { %v1725_v18 = vmul.f32 %v527_v16, %v1658_v51  ;;  %v1728_v25 = vmul.f32 %v527_v16, %v1662_v54  ;;  %554 = vperm.xlu2 %1175, %v1541_v7   ;;  %v533_v7 = vmul.f32 %v519_v45, %v1621_v9 }
 0x11a   : > { %v1733_v32 = vpop.permute.xlu1 %558 }
 0x123   : > { %v495_v47 = vpop.permute.xlu1 %494 }
 0x129   : > { %v340_v31 = vpop.permute.xlu2 %339 }
 0x134   : > { %v350_v37 = vpop.permute.xlu2 %349 }
 0x13c   : > { %v375_v50 = vpop.permute.xlu2 %374 }
 0x142   : > { %v348_v0 = vpop.permute.xlu1 %347 }
 0x143   : > { %v356_v1 = vsel %vm355_vm4, %v340_v31, %v348_v0  ;;  %v360_v16 = vsel %vm355_vm4, %v348_v0, %v340_v31 }
 0x144   : > { %v364_v33 = vmul.f32 %v1748_v58, %v360_v16  ;;  %v1759_v39 = vmul.f32 %v1751_v61, %v356_v1  ;;  %v383_v12 = vpop.permute.xlu2 %382 }
 0x145   : > { %v394_v31 = vsel %vm388_vm6, %v383_v12, %v375_v50 }
 0x146   : > { %v509_v3 = vmul.f32 %v495_v47, %v364_v33  ;;  %v510_v2 = vmul.f32 %v495_v47, %v1759_v39  ;;  %v1779_v47 = vmul.f32 %v1766_v57, %v394_v31 }
 0x148   : > { %v1770_v0 = vadd.f32 %v533_v7, %v509_v3  ;;  %v1772_v1 = vadd.f32 %v534_v52, %v510_v2  ;;  %v624_v2 = vmul.f32 %v1715_v15, %v1648_v41  ;;  %v656_v31 = vmul.f32 %v1721_v46, %v1779_v47 }
 0x149   : > { %v342_v49 = vpop.permute.xlu0 %341 }
 0x14a   : > { %2128 = vst [vmem:[#allocation23_spill] sm:$0xff] %v1770_v0  ;;  %v357_v16 = vsel %vm355_vm4, %v342_v49, %v350_v37  ;;  %v361_v45 = vsel %vm355_vm4, %v350_v37, %v342_v49  ;;  %v373_v10 = vpop.permute.xlu1 %372  ;;  %v597_v0 = vmul.f32 %v1710_v14, %v364_v33 }
 0x14b   : > { %2129 = vst [vmem:[#allocation24_spill] sm:$0xff] %v1772_v1  ;;  %v366_v53 = vmul.f32 %v1748_v58, %v361_v45  ;;  %v1783_v55 = vmul.f32 %v1751_v61, %v357_v16  ;;  %v422_v16 = vmul.f32 %v1641_v36, %v1759_v39  ;;  %v621_v1 = vmul.f32 %v1735_v35, %v1621_v9 }
 0x14c   : > { %v344_v3 = vpop.permute.xlu2 %343 }
 0x14d   : > { %v600_v7 = vmul.f32 %v1615_v56, %v1783_v55  ;;  %v1789_v52 = vmul.f32 %v499_v23, %v366_v53  ;;  %v1792_v37 = vmul.f32 %v499_v23, %v1783_v55  ;;  %v1805_v23 = vsel %vm321_vm7, 1.0, %v2127_v6 }
 0x14f   : > { %2130 = vst [vmem:[#allocation25_spill] sm:$0xff] %v1789_v52  ;;  %v632_v49 = vadd.f32 %v624_v2, %v600_v7  ;;  %v421_v52 = vmul.f32 %v1641_v36, %v364_v33 }
 0x150   : > { %2131 = vst [vmem:[#allocation26_spill] sm:$0xff] %v1792_v37  ;;  %v629_v37 = vadd.f32 %v621_v1, %v597_v0  ;;  %v599_v0 = vmul.f32 %v1615_v56, %v366_v53 }
 0x151   : > { %v1798_v45 = vadd.f32 %v656_v31, %v632_v49 }
 0x152   : > { %v381_v29 = vpop.permute.xlu1 %380 }
 0x153   : > { %2132 = vst [vmem:[#allocation27_spill] sm:$0xff] %v1798_v45  ;;  %v352_v2 = vpop.permute.xlu0 %351  ;;  %v389_v48 = vsel %vm388_vm6, %v373_v10, %v381_v29  ;;  %v393_v7 = vsel %vm388_vm6, %v381_v29, %v373_v10  ;;  %v454_v29 = vadd.f32 %v1637_v20, %v422_v16  ;;  %v453_v20 = vadd.f32 %v1629_v17, %v421_v52 }
 0x154   : > { %v358_v49 = vsel %vm355_vm4, %v344_v3, %v352_v2  ;;  %v362_v9 = vsel %vm355_vm4, %v352_v2, %v344_v3  ;;  %v1816_v31 = vmul.f32 %v1805_v23, %v389_v48  ;;  %v1819_v36 = vmul.f32 %v1766_v57, %v393_v7  ;;  %v377_v33 = vpop.permute.xlu2 %376 }
 0x155   : > { %v1822_v6 = vmul.f32 %v1748_v58, %v362_v9  ;;  %v1825_v45 = vmul.f32 %v1751_v61, %v358_v49  ;;  %v390_v48 = vsel %vm388_vm6, %v375_v50, %v383_v12  ;;  %v423_v16 = vmul.f32 %v1654_v42, %v366_v53 }
 0x156   : > { %2133 = vst [vmem:[#allocation28_spill] sm:$0xff] %v1816_v31  ;;  %v478_v10 = vmul.f32 %v1705_v13, %v1819_v36  ;;  %v653_v3 = vmul.f32 %v1633_v19, %v1816_v31  ;;  %v477_v2 = vmul.f32 %v1705_v13, %v1816_v31  ;;  %v447_v13 = vmul.f32 %v1678_v59, %v1643_v38 }
 0x157   : > { %v513_v7 = vmul.f32 %v1656_v43, %v1822_v6  ;;  %v514_v49 = vmul.f32 %v1656_v43, %v1825_v45  ;;  %v623_v12 = vmul.f32 %v1715_v15, %v1643_v38  ;;  %v1848_v50 = vmul.f32 %v1805_v23, %v390_v48 }
 0x158   : > { %v486_v1 = vadd.f32 %v478_v10, %v454_v29  ;;  %v661_v9 = vadd.f32 %v653_v3, %v629_v37  ;;  %v485_v31 = vadd.f32 %v477_v2, %v453_v20  ;;  %v598_v17 = vmul.f32 %v1710_v14, %v1759_v39 }
 0x159   : > { %v545_v56 = vadd.f32 %v1725_v18, %v513_v7  ;;  %v546_v15 = vadd.f32 %v1728_v25, %v514_v49  ;;  %v631_v29 = vadd.f32 %v623_v12, %v599_v0  ;;  %v455_v10 = vadd.f32 %v447_v13, %v423_v16 }
 0x15a   : > { %v385_v27 = vpop.permute.xlu1 %384  ;;  %677 = vrot.lane.b32.xlu2 %v486_v1, %s1401_s7  ;;  %710 = vrot.lane.b32.xlu1 %v661_v9, %s1402_s8  ;;  %v622_v14 = vmul.f32 %v1735_v35, %v1623_v11  ;;  %v654_v39 = vmul.f32 %v1633_v19, %v1819_v36  ;;  %v655_v25 = vmul.f32 %v1721_v46, %v1848_v50  ;;  %v1403_v13 = vmov 18  }
 0x15b   : > { %v391_v43 = vsel %vm388_vm6, %v377_v33, %v385_v27  ;;  %v395_v53 = vsel %vm388_vm6, %v385_v27, %v377_v33  ;;  %669 = vrot.lane.b32.xlu0 %v485_v31, %s1401_s7  ;;  %v479_v31 = vmul.f32 %v1606_v40, %v1848_v50  ;;  %v424_v11 = vmul.f32 %v1654_v42, %v1783_v55  ;;  %v379_v16 = vpop.permute.xlu0 %378 }
 0x15c   : > { %v1862_v52 = vmul.f32 %v1805_v23, %v391_v43  ;;  %v1865_v37 = vmul.f32 %v1766_v57, %v395_v53  ;;  %v346_v18 = vpop.permute.xlu2 %345  ;;  %v630_v33 = vadd.f32 %v622_v14, %v598_v17  ;;  %v663_v2 = vadd.f32 %v655_v25, %v631_v29  ;;  %1178 = vset.pattern.permute.xlu1 %v1403_v13 }
 0x15d   : > { %v487_v48 = vadd.f32 %v479_v31, %v455_v10  ;;  %v426_v46 = vmul.f32 %v1619_v62, %v1825_v45  ;;  %v448_v20 = vmul.f32 %v1678_v59, %v1648_v41  ;;  %1177 = vset.pattern.permute.xlu0 %v1403_v13  ;;  %1176 = vset.pattern.permute.xlu2 %v1403_v13 }
 0x15e   : > { %v569_v27 = vmul.f32 %v1733_v32, %v1862_v52  ;;  %v570_v3 = vmul.f32 %v1733_v32, %v1865_v37  ;;  %v662_v19 = vadd.f32 %v654_v39, %v630_v33  ;;  %v450_v32 = vmul.f32 %v1585_v21, %v1662_v54 }
 0x15f   : > { %v482_v54 = vmul.f32 %v1608_v44, %v1865_v37 }
 0x160   : > { %v1879_v7 = vadd.f32 %v569_v27, %v545_v56  ;;  %v1883_v35 = vadd.f32 %v570_v3, %v546_v15  ;;  %v456_v56 = vadd.f32 %v448_v20, %v424_v11  ;;  %v458_v43 = vadd.f32 %v450_v32, %v426_v46 }
 0x161   : > { %v481_v3 = vmul.f32 %v1608_v44, %v1862_v52 }
 0x162   : > { %v354_v49 = vpop.permute.xlu1 %353  ;;  %712 = vrot.lane.b32.xlu2 %v663_v2, %s1402_s8  ;;  %671 = vrot.lane.b32.xlu1 %v487_v48, %s1401_s7  ;;  %v490_v29 = vadd.f32 %v482_v54, %v458_v43  ;;  %v2136_v48 = vld [vmem:[#allocation25_spill] sm:$0xff] }
 0x163   : > { %v359_v42 = vsel %vm355_vm4, %v346_v18, %v354_v49  ;;  %v363_v55 = vsel %vm355_vm4, %v354_v49, %v346_v18  ;;  %718 = vrot.lane.b32.xlu0 %v662_v19, %s1402_s8  ;;  %v480_v18 = vmul.f32 %v1606_v40, %v1779_v47  ;;  %v601_v40 = vmul.f32 %v1588_v22, %v1822_v6  ;;  %v2137_v19 = vld [vmem:[#allocation26_spill] sm:$0xff] }
 0x164   : > { %v370_v0 = vmul.f32 %v1748_v58, %v363_v55  ;;  %v1900_v1 = vmul.f32 %v1751_v61, %v359_v42  ;;  %v387_v9 = vpop.permute.xlu2 %386 }
 0x165   : > { %v392_v59 = vsel %vm388_vm6, %v379_v16, %v387_v9  ;;  %v396_v12 = vsel %vm388_vm6, %v387_v9, %v379_v16  ;;  %v488_v27 = vadd.f32 %v480_v18, %v456_v56 }
 0x166   : > { %v427_v58 = vmul.f32 %v1604_v34, %v370_v0  ;;  %v515_v61 = vmul.f32 %v1742_v26, %v370_v0  ;;  %v516_v17 = vmul.f32 %v1742_v26, %v1900_v1  ;;  %v403_v53 = vmul.f32 %v1805_v23, %v392_v59  ;;  %v2140_v59 = vld [vmem:[#allocation28_spill] sm:$0xff] }
 0x167   : > { %v404_v15 = vmul.f32 %v1766_v57, %v396_v12  ;;  %v449_v26 = vmul.f32 %v1585_v21, %v1658_v51  ;;  %v627_v23 = vmul.f32 %v1689_v24, %v1680_v63  ;;  %v425_v57 = vmul.f32 %v1619_v62, %v1822_v6  ;;  %v2135_v24 = vld [vmem:[#allocation15_spill] sm:$0xff] }
 0x168   : > { %v459_v10 = vadd.f32 %v1687_v5, %v427_v58  ;;  %v548_v14 = vadd.f32 %v1696_v8, %v516_v17  ;;  %v547_v39 = vadd.f32 %v1683_v4, %v515_v61  ;;  %v483_v25 = vmul.f32 %v1617_v60, %v403_v53  ;;  %v2134_v8 = vld [vmem:[#allocation16_spill] sm:$0xff]  ;;  %v2142_v17 = vld [vmem:[#allocation23_spill] sm:$0xff] }
 0x169   : > { %v572_v4 = vmul.f32 %v1731_v28, %v404_v15  ;;  %v603_v31 = vmul.f32 %v2134_v8, %v370_v0  ;;  %v571_v63 = vmul.f32 %v1731_v28, %v403_v53  ;;  %v657_v6 = vmul.f32 %v2135_v24, %v1862_v52  ;;  %v2138_v28 = vld [vmem:[#allocation18_spill] sm:$0xff] }
 0x16a   : > { %v523_v5 = vpop.permute.xlu1 %522  ;;  %681 = vrot.lane.b32.xlu2 %v490_v29, %s1401_s7  ;;  %v491_v51 = vadd.f32 %v483_v25, %v459_v10  ;;  %v633_v49 = vadd.f32 %v2138_v28, %v601_v40  ;;  %v457_v44 = vadd.f32 %v449_v26, %v425_v57  ;;  %v428_v16 = vmul.f32 %v1604_v34, %v1900_v1  ;;  %v2141_v34 = vld [vmem:[#allocation21_spill] sm:$0xff]  ;;  %v2150_v40 = vld [vmem:[#allocation14_spill] sm:$0xff] }
 0x16b   : > { %v535_v33 = vmul.f32 %v523_v5, %v1643_v38  ;;  %v536_v21 = vmul.f32 %v523_v5, %v1648_v41  ;;  %679 = vrot.lane.b32.xlu0 %v488_v27, %s1401_s7  ;;  %v1939_v2 = vadd.f32 %v572_v4, %v548_v14  ;;  %v1947_v32 = vadd.f32 %v571_v63, %v547_v39  ;;  %v2146_v39 = vld [vmem:[#allocation20_spill] sm:$0xff]  ;;  %v2149_v57 = vld [vmem:[#allocation13_spill] sm:$0xff] }
 0x16c   : > { %v555_v62 = vpop.permute.xlu2 %554  ;;  %675 = vrot.lane.b32.xlu1 %v491_v51, %s1401_s7  ;;  %v635_v52 = vadd.f32 %v627_v23, %v603_v31  ;;  %v665_v55 = vadd.f32 %v657_v6, %v633_v49  ;;  %v489_v0 = vadd.f32 %v481_v3, %v457_v44  ;;  %v658_v58 = vmul.f32 %v2135_v24, %v1865_v37  ;;  %v2145_v37 = vld [vmem:[#allocation27_spill] sm:$0xff] }
 0x16d   : > { %v543_v11 = vadd.f32 %v535_v33, %v2136_v48  ;;  %v544_v38 = vadd.f32 %v536_v21, %v2137_v19  ;;  %v567_v41 = vmul.f32 %v555_v62, %v1848_v50  ;;  %v568_v46 = vmul.f32 %v555_v62, %v1779_v47  ;;  %v2139_v50 = vld [vmem:[#allocation17_spill] sm:$0xff]  ;;  %v2147_v23 = vld [vmem:[#allocation11_spill] sm:$0xff] }
 0x16e   : > { %v659_v9 = vmul.f32 %v2139_v50, %v403_v53  ;;  %v602_v47 = vmul.f32 %v1588_v22, %v1825_v45  ;;  %v460_v61 = vadd.f32 %v2141_v34, %v428_v16  ;;  %v2143_v22 = vld [vmem:[#allocation24_spill] sm:$0xff]  ;;  %v2144_v53 = vld [vmem:[#allocation19_spill] sm:$0xff]  ;;  %v484_v29 = vmul.f32 %v1617_v60, %v404_v15 }
 0x16f   : > { %v1949_v20 = vadd.f32 %v567_v41, %v543_v11  ;;  %v1951_v42 = vadd.f32 %v568_v46, %v544_v38  ;;  %v660_v25 = vmul.f32 %v2139_v50, %v404_v15  ;;  %v2148_v60 = vld [vmem:[#allocation12_spill] sm:$0xff]  ;;  %v2151_v3 = vmov 0.0   ;;  %v2152_v38 = vld [vmem:[#allocation22_spill] sm:$0xff] }
 0x170   : > { %v667_v13 = vadd.f32 %v659_v9, %v635_v52  ;;  %v634_v18 = vadd.f32 %v2144_v53, %v602_v47  ;;  %v492_v14 = vadd.f32 %v484_v29, %v460_v61  ;;  %v1048_v48 = vsel %vm327_vm8, 1.0, %v2151_v3 }
 0x171   : > { %vm334_vm10 = vcmp.lt.s32.totalorder %v2152_v38, 240 }
 0x172   : > { %714 = vrot.lane.b32.xlu2 %v665_v55, %s1402_s8  ;;  %v666_v10 = vadd.f32 %v658_v58, %v634_v18  ;;  %v1049_v52 = vsel %vm334_vm10, 1.0, %v2151_v3 }
 0x173   : > { %673 = vrot.lane.b32.xlu0 %v489_v0, %s1401_s7  ;;  %v551_v54 = vpop.permute.xlu1 %550 }
 0x174   : > { %v565_v12 = vmul.f32 %v551_v54, %v2140_v59  ;;  %v566_v56 = vmul.f32 %v551_v54, %v1819_v36  ;;  %716 = vrot.lane.b32.xlu1 %v667_v13, %s1402_s8  ;;  %v604_v36 = vmul.f32 %v2134_v8, %v1900_v1  ;;  %v824_v1 = vpack.c.bf16 %v2148_v60, %v2148_v60 }
 0x176   : > { %v1967_v43 = vadd.f32 %v565_v12, %v2142_v17  ;;  %v1970_v45 = vadd.f32 %v566_v56, %v2143_v22  ;;  %v636_v27 = vadd.f32 %v2146_v39, %v604_v36 }
 0x178   : > { %v668_v26 = vadd.f32 %v660_v25, %v636_v27 }
 0x17a   : > { %722 = vrot.lane.b32.xlu2 %v666_v10, %s1402_s8 }
 0x17b   : > { %683 = vrot.lane.b32.xlu0 %v492_v14, %s1401_s7  ;;  %s1333_s7 = scalar_lea.hbm %s2096_s2, 32 }
 0x17c   : > { %720 = vrot.lane.b32.xlu1 %v2145_v37, %s1402_s8  ;;  %p1335_p8 = scmp.lt.s32.totalorder %s1333_s7, %s1329_s17 }
 0x17e   : > { %p1336_p7 = por %p1335_p8, %p1334_p12 }
 0x180   : > { %p1337_p9 = pnand %p1336_p7, %p1332_p5 }
 0x182   : > { %760 = vperm.xlu2 %1176, %v2147_v23  }
 0x183   : > { %724 = vrot.lane.b32.xlu0 %v668_v26, %s1402_s8 }
 0x184   : > { %752 = vperm.xlu1 %1178, %v2148_v60  }
 0x18a   : > { %756 = vperm.xlu2 %1176, %v2149_v57  }
 0x18b   : > { %764 = vperm.xlu0 %1177, %v2150_v40  }
 0x18c   : > { %835 = vrot.lane.b32.xlu1 %v824_v1, %s1404_s13 }
 0x1b4   : > { %v678_v5 = vpop.permute.xlu2 %677 }
 0x1bc   : > { %v713_v4 = vpop.permute.xlu2 %712 }
 0x1c4   : > { %v682_v8 = vpop.permute.xlu2 %681 }
 0x1cc   : > { %v711_v15 = vpop.permute.xlu1 %710  ;;  %v715_v33 = vpop.permute.xlu2 %714 }
 0x1cd   : > { %v670_v31 = vpop.permute.xlu0 %669 }
 0x1ce   : > { %v690_v9 = vsel %vm685_vm9, %v678_v5, %v670_v31 }
 0x1cf   : > { %v694_v34 = vmul.f32 %v1048_v48, %v690_v9 }
 0x1d4   : > { %v672_v51 = vpop.permute.xlu1 %671  ;;  %v723_v62 = vpop.permute.xlu2 %722 }
 0x1d5   : > { %v719_v21 = vpop.permute.xlu0 %718  ;;  %v733_v55 = vsel %vm726_vm11, %v723_v62, %v715_v33  ;;  %v729_v50 = vsel %vm726_vm11, %v715_v33, %v723_v62 }
 0x1d6   : > { %v740_v47 = vmul.f32 %v1049_v52, %v733_v55  ;;  %v731_v59 = vsel %vm726_vm11, %v719_v21, %v711_v15 }
 0x1d7   : > { %v736_v36 = vmul.f32 %v1049_v52, %v731_v59 }
 0x1dc   : > { %v761_v19 = vpop.permute.xlu2 %760 }
 0x1dd   : > { %v680_v63 = vpop.permute.xlu0 %679 }
 0x1de   : > { %v676_v24 = vpop.permute.xlu1 %675  ;;  %v691_v28 = vsel %vm685_vm9, %v680_v63, %v672_v51 }
 0x1df   : > { %v696_v16 = vmul.f32 %v1048_v48, %v691_v28 }
 0x1e1   : > { %v704_v58 = vadd.f32 %v696_v16, %v1949_v20  ;;  %v727_v20 = vsel %vm726_vm11, %v711_v15, %v719_v21 }
 0x1e4   : > { %v757_v22 = vpop.permute.xlu2 %756 }
 0x1e5   : > { %v674_v6 = vpop.permute.xlu0 %673 }
 0x1e6   : > { %v692_v11 = vsel %vm685_vm9, %v682_v8, %v674_v6  ;;  %v717_v46 = vpop.permute.xlu1 %716  ;;  %v688_v49 = vsel %vm685_vm9, %v674_v6, %v682_v8 }
 0x1e7   : > { %v698_v41 = vmul.f32 %v1048_v48, %v692_v11  ;;  %v707_v0 = vadd.f32 %v688_v49, %v1883_v35  ;;  %v686_v35 = vsel %vm685_vm9, %v670_v31, %v678_v5 }
 0x1e8   : > { %v703_v25 = vadd.f32 %v686_v35, %v1970_v45 }
 0x1e9   : > { %v706_v44 = vadd.f32 %v698_v41, %v1879_v7  ;;  %v687_v7 = vsel %vm685_vm9, %v672_v51, %v680_v63  ;;  %v748_v12 = vadd.f32 %v740_v47, %v707_v0  ;;  %v1405_v47 = vmov 51  }
 0x1ea   : > { %v705_v53 = vadd.f32 %v687_v7, %v1951_v42  ;;  %v702_v42 = vadd.f32 %v694_v34, %v1967_v43  ;;  %1179 = vset.pattern.permute.xlu2 %v1405_v47 }
 0x1eb   : > { %v747_v54 = vadd.f32 %v729_v50, %v706_v44  ;;  %v2025_v14 = vadd.f32 %v761_v19, %v748_v12 }
 0x1ec   : > { %v743_v57 = vadd.f32 %v727_v20, %v702_v42 }
 0x1ed   : > { %v684_v13 = vpop.permute.xlu0 %683  ;;  %v2021_v18 = vadd.f32 %v761_v19, %v747_v54  ;;  %v780_v8 = vsub.f32 0.0, %v2025_v14 }
 0x1ee   : > { %v721_v56 = vpop.permute.xlu1 %720  ;;  %v693_v37 = vsel %vm685_vm9, %v684_v13, %v676_v24  ;;  %v689_v45 = vsel %vm685_vm9, %v676_v24, %v684_v13  ;;  %v2047_v13 = vld [vmem:[#allocation5] sm:$0xff] }
 0x1ef   : > { %v728_v61 = vsel %vm726_vm11, %v713_v4, %v721_v56  ;;  %v732_v17 = vsel %vm726_vm11, %v721_v56, %v713_v4  ;;  %v779_v26 = vsub.f32 0.0, %v2021_v18  ;;  %v700_v40 = vmul.f32 %v1048_v48, %v693_v37  ;;  %831 = vperm.xlu2 %1179, %v2047_v13  }
 0x1f0   : > { %v738_v29 = vmul.f32 %v1049_v52, %v732_v17  ;;  %v745_v10 = vadd.f32 %v728_v61, %v704_v58  ;;  %v744_v4 = vadd.f32 %v736_v36, %v703_v25  ;;  %v709_v3 = vadd.f32 %v689_v45, %v1939_v2 }
 0x1f1   : > { %v791_v63 = vmul.f32 1.442695, %v779_v26  ;;  %v708_v48 = vadd.f32 %v700_v40, %v1947_v32  ;;  %v793_v24 = vmul.f32 1.442695, %v780_v8 }
 0x1f2   : > { %v746_v39 = vadd.f32 %v738_v29, %v705_v53  ;;  %v2029_v27 = vadd.f32 %v757_v22, %v745_v10 }
 0x1f4   : > { %v2034_v23 = vadd.f32 %v757_v22, %v746_v39  ;;  %v777_v60 = vsub.f32 0.0, %v2029_v27 }
 0x1f5   : > { %v725_v1 = vpop.permute.xlu0 %724 }
 0x1f6   : > { %v734_v5 = vsel %vm726_vm11, %v725_v1, %v717_v46  ;;  %v778_v43 = vsub.f32 0.0, %v2034_v23  ;;  %v787_v15 = vmul.f32 1.442695, %v777_v60  ;;  %v753_v31 = vpop.permute.xlu1 %752  ;;  %v730_v6 = vsel %vm726_vm11, %v717_v46, %v725_v1 }
 0x1f7   : > { %v742_v33 = vmul.f32 %v1049_v52, %v734_v5  ;;  %v767_v21 = vadd.f32 %v753_v31, %v743_v57  ;;  %v768_v51 = vadd.f32 %v753_v31, %v744_v4  ;;  %v749_v38 = vadd.f32 %v730_v6, %v708_v48 }
 0x1f8   : > { %1214 = vpow2.f32 %v787_v15  ;;  %v789_v62 = vmul.f32 1.442695, %v778_v43 }
 0x1f9   : > { %v775_v11 = vsub.f32 0.0, %v767_v21  ;;  %v776_v19 = vsub.f32 0.0, %v768_v51  ;;  %v750_v49 = vadd.f32 %v742_v33, %v709_v3 }
 0x1fa   : > { %1216 = vpow2.f32 %v789_v62 }
 0x1fb   : > { %v783_v41 = vmul.f32 1.442695, %v775_v11  ;;  %v785_v28 = vmul.f32 1.442695, %v776_v19  ;;  %1218 = vpow2.f32 %v791_v63 }
 0x1fd   : > { %v765_v44 = vpop.permute.xlu0 %764  ;;  %1220 = vpow2.f32 %v783_v41 }
 0x1fe   : > { %v773_v52 = vadd.f32 %v765_v44, %v749_v38  ;;  %v774_v55 = vadd.f32 %v765_v44, %v750_v49  ;;  %v1215_v16 = vpop.eup %1214  ;;  %1222 = vpow2.f32 %v785_v28 }
 0x1ff   : > { %1224 = vpow2.f32 %v793_v24  ;;  %v801_v30 = vadd.f32 1.0, %v1215_v16 }
 0x200   : > { %v781_v2 = vsub.f32 0.0, %v773_v52  ;;  %v782_v46 = vsub.f32 0.0, %v774_v55  ;;  %v1217_v32 = vpop.eup %1216 }
 0x201   : > { %v802_v0 = vadd.f32 1.0, %v1217_v32  ;;  %v1219_v54 = vpop.eup %1218  ;;  %1226 = vrcp.f32 %v801_v30 }
 0x202   : > { %v795_v50 = vmul.f32 1.442695, %v781_v2  ;;  %v797_v9 = vmul.f32 1.442695, %v782_v46  ;;  %v803_v35 = vadd.f32 1.0, %v1219_v54 }
 0x203   : > { %v1221_v7 = vpop.eup %1220  ;;  %1228 = vrcp.f32 %v802_v0 }
 0x204   : > { %v1223_v59 = vpop.eup %1222  ;;  %v799_v12 = vadd.f32 1.0, %v1221_v7  ;;  %1230 = vpow2.f32 %v795_v50  ;;  %v1409_v50 = vmov 64  }
 0x205   : > { %v1225_v56 = vpop.eup %1224  ;;  %v800_v58 = vadd.f32 1.0, %v1223_v59  ;;  %1232 = vpow2.f32 %v797_v9  ;;  %1180 = vset.pattern.permute.xlu1 %v1409_v50  ;;  %1181 = vset.pattern.permute.xlu0 %v1409_v50 }
 0x206   : > { %1234 = vrcp.f32 %v799_v12  ;;  %v804_v61 = vadd.f32 1.0, %v1225_v56 }
 0x207   : > { %1236 = vrcp.f32 %v800_v58  ;;  %v1227_v34 = vpop.eup %1226 }
 0x208   : > { %1238 = vrcp.f32 %v803_v35  ;;  %v817_v39 = vmul.f32 %v1227_v34, %v2029_v27  ;;  %v836_v27 = vpop.permute.xlu1 %835 }
 0x209   : > { %v1229_v17 = vpop.eup %1228  ;;  %1240 = vrcp.f32 %v804_v61 }
 0x20a   : > { %v1231_v22 = vpop.eup %1230  ;;  %v818_v42 = vmul.f32 %v1229_v17, %v2034_v23  ;;  %v880_v23 = vld [vmem:[#allocation5] sm:$0x1] }
 0x20b   : > { %v1233_v53 = vpop.eup %1232  ;;  %v805_v29 = vadd.f32 1.0, %v1231_v22  ;;  %882 = vrot.lane.b32.xlu1 %v880_v23, %s1406_s14 }
 0x20c   : > { %v1235_v10 = vpop.eup %1234  ;;  %v806_v20 = vadd.f32 1.0, %v1233_v53 }
 0x20d   : > { %v1237_v36 = vpop.eup %1236  ;;  %1242 = vrcp.f32 %v805_v29  ;;  %v815_v37 = vmul.f32 %v1235_v10, %v767_v21 }
 0x20e   : > { %1244 = vrcp.f32 %v806_v20  ;;  %v816_v25 = vmul.f32 %v1237_v36, %v768_v51  ;;  %v1239_v1 = vpop.eup %1238 }
 0x20f   : > { %v825_v26 = vpack.c.bf16 %v817_v39, %v815_v37  ;;  %v1241_v57 = vpop.eup %1240  ;;  %v819_v4 = vmul.f32 %v1239_v1, %v2021_v18  ;;  %v1251_v37 = vld [vmem:[%s1522_s6] sm:$0xff] }
 0x210   : > { %v826_v60 = vpack.c.bf16 %v818_v42, %v816_v25  ;;  %v820_v45 = vmul.f32 %v1241_v57, %v2025_v14  ;;  %v1252_v25 = vld [vmem:[%s1522_s6 + $0x8] sm:$0xff] }
 0x213   : > { %v1243_v40 = vpop.eup %1242 }
 0x214   : > { %v1245_v5 = vpop.eup %1244  ;;  %v821_v8 = vmul.f32 %v1243_v40, %v773_v52 }
 0x215   : > { %v822_v43 = vmul.f32 %v1245_v5, %v774_v55 }
 0x216   : > { %v827_v15 = vpack.c.bf16 %v821_v8, %v819_v4 }
 0x217   : > { %v828_v31 = vpack.c.bf16 %v822_v43, %v820_v45 }
 0x218   : > { %847 = vmatpush.bf16.msra.mxu2 %v827_v15 }
 0x219   : > { %860 = vmatpush.bf16.msra.mxu3 %v828_v31 }
 0x21c   : > { %848 = vmatpush.bf16.msra.mxu2 %v825_v26 }
 0x21d   : > { %861 = vmatpush.bf16.msra.mxu3 %v826_v60 }
 0x21f   : > { %1050 = vmatmul.msk.bf16.vlgmr.msra.gmra.mxu2 %vm837_vm12, %v836_v27 }
 0x220   : > { %1051 = vmatmul.msk.bf16.vlgmr.msra.gmra.mxu3 %vm837_vm12, %v836_v27 }
 0x249   : > { %v832_v33 = vpop.permute.xlu2 %831 }
 0x27d   : > { %v883_v44 = vpop.permute.xlu1 %882 }
 0x2a2   : > { %v850_v21 = vpop.f32.mrf.mxu2 }
 0x2a3   : > { %v851_v18 = vadd.f32 %v850_v21, %v832_v33  ;;  %v863_v51 = vpop.f32.mrf.mxu3 }
 0x2a4   : > { %v864_v63 = vadd.f32 %v863_v51, %v832_v33 }
 0x2a6   : > { %v867_v14 = vadd.f32 %v864_v63, %v851_v18 }
 0x2a8   : > { %868 = vadd.xlane.f32.xlu0 %v867_v14 }
 0x2aa   : > { %v852_v62 = vpop.f32.mrf.mxu2 }
 0x2ab   : > { %v865_v6 = vpop.f32.mrf.mxu3 }
 0x31b   : > { %v869_v3 = vpop.xlane.xlu0 %868 }
 0x31c   : > { %v870_v48 = vmul.f32 0.00390625, %v869_v3 }
 0x31e   : > { %v871_v11 = vmul.f32 %v2047_v13, %v870_v48 }
 0x320   : > { %v873_v19 = vsel %vm872_vm13, %v871_v11, 0.0 }
 0x321   : > { %v874_v24 = vrot.slane %v873_v19, 4 }
 0x323   : > { %v875_v38 = vadd.f32 %v874_v24, %v873_v19 }
 0x325   : > { %v876_v41 = vrot.slane %v875_v38, 2 }
 0x327   : > { %v877_v28 = vadd.f32 %v876_v41, %v875_v38 }
 0x329   : > { %v878_v49 = vrot.slane %v877_v28, 1 }
 0x32b   : > { %v879_v52 = vadd.f32 %v878_v49, %v877_v28 }
 0x32d   : > { %v885_v55 = vadd.f32 %v883_v44, %v879_v52 }
 0x32f   : > { %v886_v16 = vmax.f32 %v885_v55, 0.0 }
 0x331   : > { %v887_v30 = vperm.slane %v886_v16, 0 }
 0x333   : > { %889 = vrot.lane.b32.xlu2 %v887_v30, %s1407_s15 }
 0x38d   : > { %v890_v2 = vpop.permute.xlu2 %889 }
 0x38e   : > { %v892_v46 = vmul.f32 %v2047_v13, %v890_v2 }
 0x390   : > { %894 = vrot.lane.b32.xlu1 %v892_v46, %s1408_s18 }
 0x402   : > { %v895_v32 = vpop.permute.xlu1 %894 }
 0x403   : > { %v898_v0 = vsel %vm897_vm14, %v895_v32, 0.0 }
 0x404   : > { %899 = vadd.xlane.f32.xlu2 %v898_v0 }
 0x477   : > { %v900_v9 = vpop.xlane.xlu2 %899 }
 0x478   : > { %v901_v47 = vadd.f32 %v2047_v13, %v900_v9 }
 0x47a   : > { %v902_v54 = vsub.f32 0.0, %v901_v47 }
 0x47c   : > { %v903_v7 = vmul.f32 1.442695, %v902_v54 }
 0x47e   : > { %1246 = vpow2.f32 %v903_v7 }
 0x484   : > { %v1247_v59 = vpop.eup %1246 }
 0x485   : > { %v905_v12 = vadd.f32 1.0, %v1247_v59 }
 0x487   : > { %1248 = vrcp.f32 %v905_v12  ;;  %v917_v34 = vand.u32 2147483648, %v905_v12  ;;  %v915_v17 = vand.u32 2147483647, %v905_v12  ;;  %vm911_vm0 = vweird.f32 %v905_v12 }
 0x489   : > { %v918_v13 = vor.u32 1.1754944e-38, %v917_v34  ;;  %vm916_vm2 = vcmp.eq.f32.partialorder %v915_v17, 8.507059e+37 }
 0x48d   : > { %v1249_v56 = vpop.eup %1248 }
 0x48e   : > { %v907_v58 = vmul.f32 %v1249_v56, %v905_v12  ;;  %vm912_vm15 = vweird.f32 %v1249_v56 }
 0x48f   : > { %vm913_vm1 = vmor %vm911_vm0, %vm912_vm15 }
 0x490   : > { %v908_v35 = vsub.f32 1.0, %v907_v58 }
 0x492   : > { %v909_v61 = vmul.f32 %v1249_v56, %v908_v35 }
 0x494   : > { %v910_v22 = vadd.f32 %v1249_v56, %v909_v61 }
 0x496   : > { %v914_v53 = vsel %vm913_vm1, %v1249_v56, %v910_v22 }
 0x497   : > { %v919_v29 = vsel %vm916_vm2, %v918_v13, %v914_v53 }
 0x498   : > { %923 = vperm.xlu1 %1180, %v919_v29  }
 0x50a   : > { %v924_v10 = vpop.permute.xlu1 %923 }
 0x50b   : > { %v926_v20 = vmul.f32 %v924_v10, %v851_v18  ;;  %v927_v36 = vmul.f32 %v924_v10, %v864_v63 }
 0x50d   : > { %v928_v39 = vadd.f32 %v1251_v37, %v926_v20  ;;  %v929_v42 = vadd.f32 %v1252_v25, %v927_v36 }
 0x50f   : > { %930 = vst [vmem:[%s178_s24] sm:$0xff] %v928_v39 }
 0x510   : > { %931 = vst [vmem:[%s178_s24 + $0x8] sm:$0xff] %v929_v42 }
 0x511   : > { %1340 = shalt.err (!%p1337_p9)
}
 0x512   : > { %1065 = dma.vmem_to_hbm [thread:$0]  (%p1485_p13), %s947_s25, 256, %s949_s3, %s933_s16  }
 0x513 PF: > { %s960_s29 = sand.u32 1, %s1371_s9   ;;  %p2153_p10 = scmp.ge.s32.totalorder %s1383_s12, 2 }
 0x514   : > { %s961_s6 = scalar_lea.sflag [#allocation4], %s960_s29 }
 0x515   : > { %p1076_p11 = pnand %p2153_p10, %p1490_p4 }
 0x517   : > { %p1077_p0 = pneg %p1076_p11 }
 0x519   : > { %1366 = dma.done.wait (%p1077_p0), %s961_s6, 256  }
 0x51a   : > { %1368 = vsyncadd (%p1077_p0), %s961_s6, 4294967040  ;;  %p16_p2 = scmp.ge.s32.totalorder %s1465_s23, 4   ;;  %s2154_s9 = smov %s1375_s10 }
 0x51b   : > { %s2155_s10 = smov %s1379_s11  ;;  %s2156_s11 = smov %s1477_s26 }
 0x51c   : > { %s2157_s12 = smov %s1465_s23  ;;  %18 = sbr.rel (!%p16_p2) target bundleno = 6 (0x6), region = 77 }
 0x521   :  { %967 = vsyncpa [#allocation3], 1 }
 0x522   :  { %969 = vsyncpa [#allocation3 + $0x1], 1 }
 0x523   :  { %970 = vsyncpa [#allocation6], 1 }
 0x524   :  { %971 = vsyncpa [#allocation4], 1 }
 0x525   :  { %973 = vsyncpa [#allocation4 + $0x1], 1 }

</bundles_post_ra>
